<compile_context>
chip_gen: v5e
topology: v5e:2x2
jax: 0.10.0
libtpu: 0.0.40
codegen_flags: <defaults>
</compile_context>

<pallas_src>
import jax
import jax.numpy as jnp
from jax.experimental import pallas as pl
from jax.experimental.pallas import tpu as pltpu

jax.config.update("jax_default_matmul_precision", "highest")

PAD_IDX = 0

# problem sizes (small, consistent with the module's forward)
B = 8      # batch
S = 16     # src_len (deliberately != B)
E = 32     # emb_dim
HE = 32    # enc_hid_dim
HD = 32    # dec_hid_dim
O = 64     # output_dim (vocab)

_HIGHEST = jax.lax.Precision.HIGHEST


def _dot(a, b):
    return jnp.dot(a, b, preferred_element_type=jnp.float32, precision=_HIGHEST)


def decoder_kernel(emb_ref, h0_ref, enc_ref,
                   wa_e_ref, ba_ref, v_ref,
                   w_hcat_ref, bhh_ref,
                   wih_e_ref, wih_w_ref, bih_ref,
                   wout_h_ref, wout_w_ref, wout_e_ref, bout_ref,
                   pred_ref, hlast_ref,
                   h_sc, eproj_sc):
    t = pl.program_id(0)

    # ---- loop-invariant init: carry hidden in VMEM; hoist the encoder projection
    #      (enc @ Wa_e + ba) out of the per-step path.
    @pl.when(t == 0)
    def _init():
        h_sc[...] = h0_ref[...]
        enc2 = enc_ref[...].reshape(B * S, HE)
        eproj_sc[...] = (_dot(enc2, wa_e_ref[...]) + ba_ref[...]).reshape(B, S, HD)

    emb = emb_ref[...]            # [B, E]   (embedding row for this step, gathered outside)
    h = h_sc[...]                 # [B, HD]
    enc = enc_ref[...]            # [B, S, HE]

    # ---- attention-independent matmuls first (MXU work overlaps the attention block)
    gi_e = _dot(emb, wih_e_ref[...])        # [B, 3*HD]   (emb part of GRU input gates)
    pred_e = _dot(emb, wout_e_ref[...])     # [B, O]      (emb part of fc_out)
    hcat = _dot(h, w_hcat_ref[...])         # [B, 4*HD] = [B, 128], single MXU push
    e_h = hcat[:, :HD]                      # == h @ Wa_h
    gh = hcat[:, HD:] + bhh_ref[...]        # == h @ Whh + bhh

    # ---- attention: softmax_s( v . tanh(Wa_h h + Wa_e enc_s + ba) )
    energy = jnp.tanh(e_h[:, None, :] + eproj_sc[...])        # [B, S, HD]
    scores = jnp.sum(energy * v_ref[...][None], axis=-1)      # [B, S]
    m = jnp.max(scores, axis=-1, keepdims=True)
    p = jnp.exp(scores - m)
    a = p / jnp.sum(p, axis=-1, keepdims=True)                # [B, S]
    weighted = jnp.sum(a[:, :, None] * enc, axis=1)           # [B, HE]  (bmm context)

    # ---- single-step GRU cell (PyTorch gate order r, z, n), concat-free:
    #      gi = [emb ; weighted] @ Wih + bih
    gi = gi_e + _dot(weighted, wih_w_ref[...]) + bih_ref[...]
    r = jax.nn.sigmoid(gi[:, :HD] + gh[:, :HD])
    z = jax.nn.sigmoid(gi[:, HD:2 * HD] + gh[:, HD:2 * HD])
    n = jnp.tanh(gi[:, 2 * HD:] + r * gh[:, 2 * HD:])
    h_new = (1.0 - z) * n + z * h                             # [B, HD]

    # ---- fc_out over cat(output, weighted, embedded), concat-free
    pred = (_dot(h_new, wout_h_ref[...]) + _dot(weighted, wout_w_ref[...])
            + pred_e + bout_ref[...])                         # [B, O]

    h_sc[...] = h_new
    pred_ref[...] = pred
    hlast_ref[...] = h_new


def decoder_decode(tokens_seq, hidden0, encoder_outputs, params):
    """Fused (teacher-forced) decode over T steps in one pallas_call.

    tokens_seq [T, B] int32, hidden0 [B, HD], encoder_outputs [S, B, HE] (PyTorch layout).
    Returns (predictions [T, B, O], final hidden [B, HD]).
    """
    T = tokens_seq.shape[0]

    # One embedding gather + one transpose for the whole decode (not per step).
    embedded_seq = jnp.take(params["emb_table"], tokens_seq, axis=0)       # [T, B, E]
    # TODO(synk): training-mode dropout not applied (eval semantics).
    enc_bsh = jnp.transpose(encoder_outputs, (1, 0, 2))                    # [B, S, HE]

    # Weight plumbing (once per call): fuse the two h-consuming matmuls, split
    # the concat-consuming weights.
    w_hcat = jnp.concatenate([params["wa_h"], params["whh"]], axis=1)      # [HD, 4*HD]
    wih_e, wih_w = params["wih"][:E], params["wih"][E:]
    wout_h = params["wout"][:HD]
    wout_w = params["wout"][HD:HD + HE]
    wout_e = params["wout"][HD + HE:]

    def const2(shape):
        return pl.BlockSpec(shape, lambda t: (0, 0))

    in_specs = [
        pl.BlockSpec((None, B, E), lambda t: (t, 0, 0)),      # embedded_seq (per-step)
        const2((B, HD)),                                      # h0
        pl.BlockSpec((B, S, HE), lambda t: (0, 0, 0)),        # encoder outputs (resident)
        const2((HE, HD)), const2((1, HD)), const2((1, HD)),   # wa_e, ba, v
        const2((HD, 4 * HD)), const2((1, 3 * HD)),            # [wa_h|whh], bhh
        const2((E, 3 * HD)), const2((HE, 3 * HD)), const2((1, 3 * HD)),    # wih_e, wih_w, bih
        const2((HD, O)), const2((HE, O)), const2((E, O)), const2((1, O)),  # wout_h/w/e, bout
    ]
    out_specs = (
        pl.BlockSpec((None, B, O), lambda t: (t, 0, 0)),      # predictions (per-step)
        const2((B, HD)),                                      # final hidden (resident)
    )

    flops_per_step = 2 * B * (HD * 4 * HD + E * 3 * HD + HE * 3 * HD
                              + HD * O + HE * O + E * O)
    cost = pl.CostEstimate(
        flops=T * flops_per_step + 2 * B * S * HE * HD,
        transcendentals=T * (B * S * HD + B * S + 3 * B * HD),
        bytes_accessed=4 * (T * B * (E + O) + B * S * HE + 2 * B * HD
                            + HD * 4 * HD + (E + HE) * 3 * HD + (HD + HE + E) * O),
    )

    grid_spec = pltpu.PrefetchScalarGridSpec(
        num_scalar_prefetch=0,
        grid=(T,),
        in_specs=in_specs,
        out_specs=out_specs,
        scratch_shapes=[pltpu.VMEM((B, HD), jnp.float32),        # carried hidden
                        pltpu.VMEM((B, S, HD), jnp.float32)],    # hoisted enc projection
    )

    preds, h_last = pl.pallas_call(
        decoder_kernel,
        out_shape=(jax.ShapeDtypeStruct((T, B, O), jnp.float32),
                   jax.ShapeDtypeStruct((B, HD), jnp.float32)),
        grid_spec=grid_spec,
        compiler_params=pltpu.CompilerParams(
            dimension_semantics=("arbitrary",)),   # hidden carried step -> step
        cost_estimate=cost,
    )(embedded_seq, hidden0, enc_bsh,
      params["wa_e"], params["ba"], params["v"],
      w_hcat, params["bhh"],
      wih_e, wih_w, params["bih"],
      wout_h, wout_w, wout_e, params["bout"])
    return preds, h_last


def decoder_forward(tokens, hidden, encoder_outputs, params):
    """Exactly one Decoder.forward step (the PyTorch module's semantics)."""
    preds, h_new = decoder_decode(tokens[None, :], hidden, encoder_outputs, params)
    return preds[0], h_new


# ----------------------------- pure-JAX reference -----------------------------

def reference_step(tokens, hidden, encoder_outputs, params):
    embedded = jnp.take(params["emb_table"], tokens, axis=0)               # [B, E]
    enc = jnp.transpose(encoder_outputs, (1, 0, 2))                        # [B, S, HE]
    energy = jnp.tanh((hidden @ params["wa_h"])[:, None, :]                # correct broadcast
                      + jnp.einsum("bse,eh->bsh", enc, params["wa_e"], precision=_HIGHEST)
                      + params["ba"][None])
    scores = jnp.sum(energy * params["v"][None], axis=-1)
    a = jax.nn.softmax(scores, axis=-1)
    weighted = jnp.einsum("bs,bse->be", a, enc, precision=_HIGHEST)
    x = jnp.concatenate([embedded, weighted], axis=1)
    gi = x @ params["wih"] + params["bih"]
    gh = hidden @ params["whh"] + params["bhh"]
    r = jax.nn.sigmoid(gi[:, :HD] + gh[:, :HD])
    z = jax.nn.sigmoid(gi[:, HD:2 * HD] + gh[:, HD:2 * HD])
    n = jnp.tanh(gi[:, 2 * HD:] + r * gh[:, 2 * HD:])
    h_new = (1.0 - z) * n + z * hidden
    feat = jnp.concatenate([h_new, weighted, embedded], axis=1)
    pred = feat @ params["wout"] + params["bout"]
    return pred, h_new


def reference_decode(tokens_seq, hidden0, encoder_outputs, params):
    h = hidden0
    preds = []
    for t in range(tokens_seq.shape[0]):
        p, h = reference_step(tokens_seq[t], h, encoder_outputs, params)
        preds.append(p)
    return jnp.stack(preds), h


def make_params(key):
    ks = jax.random.split(key, 16)
    s = 0.1
    emb_table = s * jax.random.normal(ks[0], (O, E), jnp.float32)
    emb_table = emb_table.at[PAD_IDX].set(0.0)                             # padding_idx
    return dict(
        emb_table=emb_table,
        # attention: Linear(HE + HD -> HD) split into hidden / encoder parts, v: Linear(HD -> 1)
        wa_h=s * jax.random.normal(ks[1], (HD, HD), jnp.float32),
        wa_e=s * jax.random.normal(ks[2], (HE, HD), jnp.float32),
        ba=s * jax.random.normal(ks[3], (1, HD), jnp.float32),
        v=s * jax.random.normal(ks[4], (1, HD), jnp.float32),
        # GRU(E + HE -> HD), pre-transposed to (in, 3*HD), gate order r, z, n
        wih=s * jax.random.normal(ks[5], (E + HE, 3 * HD), jnp.float32),
        whh=s * jax.random.normal(ks[6], (HD, 3 * HD), jnp.float32),
        bih=s * jax.random.normal(ks[7], (1, 3 * HD), jnp.float32),
        bhh=s * jax.random.normal(ks[8], (1, 3 * HD), jnp.float32),
        # fc_out: Linear(HD + HE + E -> O), pre-transposed
        wout=s * jax.random.normal(ks[9], (HD + HE + E, O), jnp.float32),
        bout=s * jax.random.normal(ks[10], (1, O), jnp.float32),
    )


if __name__ == "__main__":
    key = jax.random.PRNGKey(0)
    kp, k1, k2, k3 = jax.random.split(key, 4)
    params = make_params(kp)

    T = 4
    tokens_seq = jax.random.randint(k1, (T, B), 0, O, dtype=jnp.int32)
    tokens_seq = tokens_seq.at[0, 0].set(PAD_IDX)                          # exercise padding_idx
    hidden0 = jax.random.normal(k2, (B, HD), jnp.float32)
    encoder_outputs = jax.random.normal(k3, (S, B, HE), jnp.float32)       # PyTorch layout [S, B, HE]

    # fused multi-step decode (one pallas_call for all T steps)
    preds, h_last = jax.jit(decoder_decode)(tokens_seq, hidden0, encoder_outputs, params)
    jax.block_until_ready((preds, h_last))

    ref_preds, ref_h = reference_decode(tokens_seq, hidden0, encoder_outputs, params)
    assert preds.shape == (T, B, O) and h_last.shape == (B, HD)
    assert jnp.allclose(preds, ref_preds, atol=1e-3, rtol=1e-3), \
        float(jnp.max(jnp.abs(preds - ref_preds)))
    assert jnp.allclose(h_last, ref_h, atol=1e-3, rtol=1e-3), \
        float(jnp.max(jnp.abs(h_last - ref_h)))

    # single step == the PyTorch module's forward()
    pred1, hid1 = jax.jit(decoder_forward)(tokens_seq[0], hidden0, encoder_outputs, params)
    jax.block_until_ready((pred1, hid1))
    ref_p1, ref_h1 = reference_step(tokens_seq[0], hidden0, encoder_outputs, params)
    assert jnp.allclose(pred1, ref_p1, atol=1e-3, rtol=1e-3)
    assert jnp.allclose(hid1, ref_h1, atol=1e-3, rtol=1e-3)

    print("KERNEL_OK")
</pallas_src>

<mosaic_0001>
module attributes {stable_mosaic.version = 11 : i64} {
  func.func @decoder_kernel(%arg0: i32, %arg1: memref<1x8x32xf32, #tpu.memory_space<vmem>>, %arg2: memref<8x32xf32, #tpu.memory_space<vmem>>, %arg3: memref<8x16x32xf32, #tpu.memory_space<vmem>>, %arg4: memref<32x32xf32, #tpu.memory_space<vmem>>, %arg5: memref<1x32xf32, #tpu.memory_space<vmem>>, %arg6: memref<1x32xf32, #tpu.memory_space<vmem>>, %arg7: memref<32x128xf32, #tpu.memory_space<vmem>>, %arg8: memref<1x96xf32, #tpu.memory_space<vmem>>, %arg9: memref<32x96xf32, #tpu.memory_space<vmem>>, %arg10: memref<32x96xf32, #tpu.memory_space<vmem>>, %arg11: memref<1x96xf32, #tpu.memory_space<vmem>>, %arg12: memref<32x64xf32, #tpu.memory_space<vmem>>, %arg13: memref<32x64xf32, #tpu.memory_space<vmem>>, %arg14: memref<32x64xf32, #tpu.memory_space<vmem>>, %arg15: memref<1x64xf32, #tpu.memory_space<vmem>>, %arg16: memref<1x8x64xf32, #tpu.memory_space<vmem>>, %arg17: memref<8x32xf32, #tpu.memory_space<vmem>>, %arg18: memref<8x32xf32, #tpu.memory_space<vmem>>, %arg19: memref<8x16x32xf32, #tpu.memory_space<vmem>>) attributes {dimension_semantics = [#tpu.dimension_semantics<arbitrary>], iteration_bounds = array<i64: 4>, scalar_prefetch = 0 : i64, scratch_operands = 2 : i64, tpu.core_type = #tpu.core_type<tc>, window_params = [{transform_indices = @transform_0, window_bounds = array<i64: 1, 8, 32>}, {pipeline_mode = #tpu.pipeline_mode<synchronous>, transform_indices = @transform_1, window_bounds = array<i64: 8, 32>}, {pipeline_mode = #tpu.pipeline_mode<synchronous>, transform_indices = @transform_2, window_bounds = array<i64: 8, 16, 32>}, {pipeline_mode = #tpu.pipeline_mode<synchronous>, transform_indices = @transform_3, window_bounds = array<i64: 32, 32>}, {pipeline_mode = #tpu.pipeline_mode<synchronous>, transform_indices = @transform_4, window_bounds = array<i64: 1, 32>}, {pipeline_mode = #tpu.pipeline_mode<synchronous>, transform_indices = @transform_5, window_bounds = array<i64: 1, 32>}, {pipeline_mode = #tpu.pipeline_mode<synchronous>, transform_indices = @transform_6, window_bounds = array<i64: 32, 128>}, {pipeline_mode = #tpu.pipeline_mode<synchronous>, transform_indices = @transform_7, window_bounds = array<i64: 1, 96>}, {pipeline_mode = #tpu.pipeline_mode<synchronous>, transform_indices = @transform_8, window_bounds = array<i64: 32, 96>}, {pipeline_mode = #tpu.pipeline_mode<synchronous>, transform_indices = @transform_9, window_bounds = array<i64: 32, 96>}, {pipeline_mode = #tpu.pipeline_mode<synchronous>, transform_indices = @transform_10, window_bounds = array<i64: 1, 96>}, {pipeline_mode = #tpu.pipeline_mode<synchronous>, transform_indices = @transform_11, window_bounds = array<i64: 32, 64>}, {pipeline_mode = #tpu.pipeline_mode<synchronous>, transform_indices = @transform_12, window_bounds = array<i64: 32, 64>}, {pipeline_mode = #tpu.pipeline_mode<synchronous>, transform_indices = @transform_13, window_bounds = array<i64: 32, 64>}, {pipeline_mode = #tpu.pipeline_mode<synchronous>, transform_indices = @transform_14, window_bounds = array<i64: 1, 64>}, {transform_indices = @transform_15, window_bounds = array<i64: 1, 8, 64>}, {pipeline_mode = #tpu.pipeline_mode<synchronous>, transform_indices = @transform_16, window_bounds = array<i64: 8, 32>}]} {
    %c0_i32 = arith.constant 0 : i32
    %0 = arith.cmpi eq, %arg0, %c0_i32 : i32
    %1 = arith.extui %0 : i1 to i32
    %c0_i32_0 = arith.constant 0 : i32
    %2 = arith.cmpi ne, %1, %c0_i32_0 : i32
    scf.if %2 {
      %c0_50 = arith.constant 0 : index
      %c0_51 = arith.constant 0 : index
      %87 = vector.load %arg2[%c0_50, %c0_51] : memref<8x32xf32, #tpu.memory_space<vmem>>, vector<8x32xf32>
      %c0_52 = arith.constant 0 : index
      %c0_53 = arith.constant 0 : index
      %88 = vector.load %arg18[%c0_52, %c0_53] : memref<8x32xf32, #tpu.memory_space<vmem>>, vector<8x32xf32>
      tpu.vector_store %arg18[%c0_52, %c0_53], %87 {strides = array<i32>} : memref<8x32xf32, #tpu.memory_space<vmem>>, vector<8x32xf32>,
      %c0_54 = arith.constant 0 : index
      %c0_55 = arith.constant 0 : index
      %c0_56 = arith.constant 0 : index
      %89 = vector.load %arg3[%c0_54, %c0_55, %c0_56] : memref<8x16x32xf32, #tpu.memory_space<vmem>>, vector<8x16x32xf32>
      %90 = vector.shape_cast %89 : vector<8x16x32xf32> to vector<128x32xf32>
      %c0_57 = arith.constant 0 : index
      %c0_58 = arith.constant 0 : index
      %91 = vector.load %arg4[%c0_57, %c0_58] : memref<32x32xf32, #tpu.memory_space<vmem>>, vector<32x32xf32>
      %cst_59 = arith.constant dense<0.000000e+00> : vector<128x32xf32>
      %92 = tpu.matmul %90, %91, %cst_59 {dimension_numbers = #tpu.dot_dimension_numbers<[1], [0], [0], [1], [0, 0, 1, 1], [], []>, precision = #tpu.contract_precision<fp32>} : vector<128x32xf32>, vector<32x32xf32>, vector<128x32xf32> -> vector<128x32xf32>
      %c0_60 = arith.constant 0 : index
      %c0_61 = arith.constant 0 : index
      %93 = vector.load %arg5[%c0_60, %c0_61] : memref<1x32xf32, #tpu.memory_space<vmem>>, vector<1x32xf32>
      %94 = vector.broadcast %93 : vector<1x32xf32> to vector<128x32xf32>
      %95 = arith.addf %92, %94 : vector<128x32xf32>
      %96 = vector.shape_cast %95 : vector<128x32xf32> to vector<8x16x32xf32>
      %c0_62 = arith.constant 0 : index
      %c0_63 = arith.constant 0 : index
      %c0_64 = arith.constant 0 : index
      %97 = vector.load %arg19[%c0_62, %c0_63, %c0_64] : memref<8x16x32xf32, #tpu.memory_space<vmem>>, vector<8x16x32xf32>
      tpu.vector_store %arg19[%c0_62, %c0_63, %c0_64], %96 {strides = array<i32>} : memref<8x16x32xf32, #tpu.memory_space<vmem>>, vector<8x16x32xf32>,
    } else {
    }
    %c0 = arith.constant 0 : index
    %c0_1 = arith.constant 0 : index
    %c0_2 = arith.constant 0 : index
    %3 = vector.load %arg1[%c0, %c0_1, %c0_2] : memref<1x8x32xf32, #tpu.memory_space<vmem>>, vector<1x8x32xf32>
    %4 = vector.shape_cast %3 : vector<1x8x32xf32> to vector<8x32xf32>
    %c0_3 = arith.constant 0 : index
    %c0_4 = arith.constant 0 : index
    %5 = vector.load %arg18[%c0_3, %c0_4] : memref<8x32xf32, #tpu.memory_space<vmem>>, vector<8x32xf32>
    %c0_5 = arith.constant 0 : index
    %c0_6 = arith.constant 0 : index
    %c0_7 = arith.constant 0 : index
    %6 = vector.load %arg3[%c0_5, %c0_6, %c0_7] : memref<8x16x32xf32, #tpu.memory_space<vmem>>, vector<8x16x32xf32>
    %c0_8 = arith.constant 0 : index
    %c0_9 = arith.constant 0 : index
    %7 = vector.load %arg9[%c0_8, %c0_9] : memref<32x96xf32, #tpu.memory_space<vmem>>, vector<32x96xf32>
    %cst = arith.constant dense<0.000000e+00> : vector<8x96xf32>
    %8 = tpu.matmul %4, %7, %cst {dimension_numbers = #tpu.dot_dimension_numbers<[1], [0], [0], [1], [0, 0, 1, 1], [], []>, precision = #tpu.contract_precision<fp32>} : vector<8x32xf32>, vector<32x96xf32>, vector<8x96xf32> -> vector<8x96xf32>
    %c0_10 = arith.constant 0 : index
    %c0_11 = arith.constant 0 : index
    %9 = vector.load %arg14[%c0_10, %c0_11] : memref<32x64xf32, #tpu.memory_space<vmem>>, vector<32x64xf32>
    %cst_12 = arith.constant dense<0.000000e+00> : vector<8x64xf32>
    %10 = tpu.matmul %4, %9, %cst_12 {dimension_numbers = #tpu.dot_dimension_numbers<[1], [0], [0], [1], [0, 0, 1, 1], [], []>, precision = #tpu.contract_precision<fp32>} : vector<8x32xf32>, vector<32x64xf32>, vector<8x64xf32> -> vector<8x64xf32>
    %c0_13 = arith.constant 0 : index
    %c0_14 = arith.constant 0 : index
    %11 = vector.load %arg7[%c0_13, %c0_14] : memref<32x128xf32, #tpu.memory_space<vmem>>, vector<32x128xf32>
    %cst_15 = arith.constant dense<0.000000e+00> : vector<8x128xf32>
    %12 = tpu.matmul %5, %11, %cst_15 {dimension_numbers = #tpu.dot_dimension_numbers<[1], [0], [0], [1], [0, 0, 1, 1], [], []>, precision = #tpu.contract_precision<fp32>} : vector<8x32xf32>, vector<32x128xf32>, vector<8x128xf32> -> vector<8x128xf32>
    %13 = vector.extract_strided_slice %12 {offsets = [0, 0], sizes = [8, 32], strides = [1, 1]} : vector<8x128xf32> to vector<8x32xf32>
    %14 = vector.extract_strided_slice %12 {offsets = [0, 32], sizes = [8, 96], strides = [1, 1]} : vector<8x128xf32> to vector<8x96xf32>
    %c0_16 = arith.constant 0 : index
    %c0_17 = arith.constant 0 : index
    %15 = vector.load %arg8[%c0_16, %c0_17] : memref<1x96xf32, #tpu.memory_space<vmem>>, vector<1x96xf32>
    %16 = vector.broadcast %15 : vector<1x96xf32> to vector<8x96xf32>
    %17 = arith.addf %14, %16 : vector<8x96xf32>
    %18 = vector.shape_cast %13 : vector<8x32xf32> to vector<8x1x32xf32>
    %c0_18 = arith.constant 0 : index
    %c0_19 = arith.constant 0 : index
    %c0_20 = arith.constant 0 : index
    %19 = vector.load %arg19[%c0_18, %c0_19, %c0_20] : memref<8x16x32xf32, #tpu.memory_space<vmem>>, vector<8x16x32xf32>
    %20 = vector.broadcast %18 : vector<8x1x32xf32> to vector<8x16x32xf32>
    %21 = arith.addf %20, %19 : vector<8x16x32xf32>
    %22 = math.tanh %21 : vector<8x16x32xf32>
    %c0_21 = arith.constant 0 : index
    %c0_22 = arith.constant 0 : index
    %23 = vector.load %arg6[%c0_21, %c0_22] : memref<1x32xf32, #tpu.memory_space<vmem>>, vector<1x32xf32>
    %24 = vector.shape_cast %23 : vector<1x32xf32> to vector<1x1x32xf32>
    %25 = vector.broadcast %24 : vector<1x1x32xf32> to vector<8x16x32xf32>
    %26 = arith.mulf %22, %25 : vector<8x16x32xf32>
    %cst_23 = arith.constant dense<0.000000e+00> : vector<8x16xf32>
    %27 = vector.multi_reduction <add>, %26, %cst_23 [2] : vector<8x16x32xf32> to vector<8x16xf32>
    %cst_24 = arith.constant dense<0xFF800000> : vector<8xf32>
    %28 = vector.multi_reduction <maximumf>, %27, %cst_24 [1] : vector<8x16xf32> to vector<8xf32>
    %29 = vector.shape_cast %28 : vector<8xf32> to vector<8x1xf32>
    %30 = vector.broadcast %29 : vector<8x1xf32> to vector<8x16xf32>
    %31 = arith.subf %27, %30 : vector<8x16xf32>
    %32 = math.exp %31 : vector<8x16xf32>
    %cst_25 = arith.constant dense<0.000000e+00> : vector<8xf32>
    %33 = vector.multi_reduction <add>, %32, %cst_25 [1] : vector<8x16xf32> to vector<8xf32>
    %34 = vector.shape_cast %33 : vector<8xf32> to vector<8x1xf32>
    %35 = vector.broadcast %34 : vector<8x1xf32> to vector<8x16xf32>
    %36 = arith.divf %32, %35 : vector<8x16xf32>
    %37 = vector.shape_cast %36 : vector<8x16xf32> to vector<8x16x1xf32>
    %38 = vector.broadcast %37 : vector<8x16x1xf32> to vector<8x16x32xf32>
    %39 = arith.mulf %38, %6 : vector<8x16x32xf32>
    %cst_26 = arith.constant dense<0.000000e+00> : vector<8x32xf32>
    %40 = vector.multi_reduction <add>, %39, %cst_26 [1] : vector<8x16x32xf32> to vector<8x32xf32>
    %c0_27 = arith.constant 0 : index
    %c0_28 = arith.constant 0 : index
    %41 = vector.load %arg10[%c0_27, %c0_28] : memref<32x96xf32, #tpu.memory_space<vmem>>, vector<32x96xf32>
    %cst_29 = arith.constant dense<0.000000e+00> : vector<8x96xf32>
    %42 = tpu.matmul %40, %41, %cst_29 {dimension_numbers = #tpu.dot_dimension_numbers<[1], [0], [0], [1], [0, 0, 1, 1], [], []>, precision = #tpu.contract_precision<fp32>} : vector<8x32xf32>, vector<32x96xf32>, vector<8x96xf32> -> vector<8x96xf32>
    %43 = arith.addf %8, %42 : vector<8x96xf32>
    %c0_30 = arith.constant 0 : index
    %c0_31 = arith.constant 0 : index
    %44 = vector.load %arg11[%c0_30, %c0_31] : memref<1x96xf32, #tpu.memory_space<vmem>>, vector<1x96xf32>
    %45 = vector.broadcast %44 : vector<1x96xf32> to vector<8x96xf32>
    %46 = arith.addf %43, %45 : vector<8x96xf32>
    %47 = vector.extract_strided_slice %46 {offsets = [0, 0], sizes = [8, 32], strides = [1, 1]} : vector<8x96xf32> to vector<8x32xf32>
    %48 = vector.extract_strided_slice %17 {offsets = [0, 0], sizes = [8, 32], strides = [1, 1]} : vector<8x96xf32> to vector<8x32xf32>
    %49 = arith.addf %47, %48 : vector<8x32xf32>
    %50 = arith.negf %49 : vector<8x32xf32>
    %51 = math.exp %50 : vector<8x32xf32>
    %cst_32 = arith.constant 1.000000e+00 : f32
    %52 = vector.broadcast %cst_32 : f32 to vector<8x32xf32>
    %53 = arith.addf %52, %51 : vector<8x32xf32>
    %54 = arith.divf %52, %53 : vector<8x32xf32>
    %55 = vector.extract_strided_slice %46 {offsets = [0, 32], sizes = [8, 32], strides = [1, 1]} : vector<8x96xf32> to vector<8x32xf32>
    %56 = vector.extract_strided_slice %17 {offsets = [0, 32], sizes = [8, 32], strides = [1, 1]} : vector<8x96xf32> to vector<8x32xf32>
    %57 = arith.addf %55, %56 : vector<8x32xf32>
    %58 = arith.negf %57 : vector<8x32xf32>
    %59 = math.exp %58 : vector<8x32xf32>
    %cst_33 = arith.constant 1.000000e+00 : f32
    %60 = vector.broadcast %cst_33 : f32 to vector<8x32xf32>
    %61 = arith.addf %60, %59 : vector<8x32xf32>
    %62 = arith.divf %60, %61 : vector<8x32xf32>
    %63 = vector.extract_strided_slice %46 {offsets = [0, 64], sizes = [8, 32], strides = [1, 1]} : vector<8x96xf32> to vector<8x32xf32>
    %64 = vector.extract_strided_slice %17 {offsets = [0, 64], sizes = [8, 32], strides = [1, 1]} : vector<8x96xf32> to vector<8x32xf32>
    %65 = arith.mulf %54, %64 : vector<8x32xf32>
    %66 = arith.addf %63, %65 : vector<8x32xf32>
    %67 = math.tanh %66 : vector<8x32xf32>
    %cst_34 = arith.constant 1.000000e+00 : f32
    %68 = vector.broadcast %cst_34 : f32 to vector<8x32xf32>
    %69 = arith.subf %68, %62 : vector<8x32xf32>
    %70 = arith.mulf %69, %67 : vector<8x32xf32>
    %71 = arith.mulf %62, %5 : vector<8x32xf32>
    %72 = arith.addf %70, %71 : vector<8x32xf32>
    %c0_35 = arith.constant 0 : index
    %c0_36 = arith.constant 0 : index
    %73 = vector.load %arg12[%c0_35, %c0_36] : memref<32x64xf32, #tpu.memory_space<vmem>>, vector<32x64xf32>
    %cst_37 = arith.constant dense<0.000000e+00> : vector<8x64xf32>
    %74 = tpu.matmul %72, %73, %cst_37 {dimension_numbers = #tpu.dot_dimension_numbers<[1], [0], [0], [1], [0, 0, 1, 1], [], []>, precision = #tpu.contract_precision<fp32>} : vector<8x32xf32>, vector<32x64xf32>, vector<8x64xf32> -> vector<8x64xf32>
    %c0_38 = arith.constant 0 : index
    %c0_39 = arith.constant 0 : index
    %75 = vector.load %arg13[%c0_38, %c0_39] : memref<32x64xf32, #tpu.memory_space<vmem>>, vector<32x64xf32>
    %cst_40 = arith.constant dense<0.000000e+00> : vector<8x64xf32>
    %76 = tpu.matmul %40, %75, %cst_40 {dimension_numbers = #tpu.dot_dimension_numbers<[1], [0], [0], [1], [0, 0, 1, 1], [], []>, precision = #tpu.contract_precision<fp32>} : vector<8x32xf32>, vector<32x64xf32>, vector<8x64xf32> -> vector<8x64xf32>
    %77 = arith.addf %74, %76 : vector<8x64xf32>
    %78 = arith.addf %77, %10 : vector<8x64xf32>
    %c0_41 = arith.constant 0 : index
    %c0_42 = arith.constant 0 : index
    %79 = vector.load %arg15[%c0_41, %c0_42] : memref<1x64xf32, #tpu.memory_space<vmem>>, vector<1x64xf32>
    %80 = vector.broadcast %79 : vector<1x64xf32> to vector<8x64xf32>
    %81 = arith.addf %78, %80 : vector<8x64xf32>
    %c0_43 = arith.constant 0 : index
    %c0_44 = arith.constant 0 : index
    %82 = vector.load %arg18[%c0_43, %c0_44] : memref<8x32xf32, #tpu.memory_space<vmem>>, vector<8x32xf32>
    tpu.vector_store %arg18[%c0_43, %c0_44], %72 {strides = array<i32>} : memref<8x32xf32, #tpu.memory_space<vmem>>, vector<8x32xf32>,
    %c0_45 = arith.constant 0 : index
    %c0_46 = arith.constant 0 : index
    %c0_47 = arith.constant 0 : index
    %83 = vector.load %arg16[%c0_45, %c0_46, %c0_47] : memref<1x8x64xf32, #tpu.memory_space<vmem>>, vector<1x8x64xf32>
    %84 = vector.shape_cast %83 : vector<1x8x64xf32> to vector<8x64xf32>
    %85 = vector.shape_cast %81 : vector<8x64xf32> to vector<1x8x64xf32>
    tpu.vector_store %arg16[%c0_45, %c0_46, %c0_47], %85 {strides = array<i32>} : memref<1x8x64xf32, #tpu.memory_space<vmem>>, vector<1x8x64xf32>,
    %c0_48 = arith.constant 0 : index
    %c0_49 = arith.constant 0 : index
    %86 = vector.load %arg17[%c0_48, %c0_49] : memref<8x32xf32, #tpu.memory_space<vmem>>, vector<8x32xf32>
    tpu.vector_store %arg17[%c0_48, %c0_49], %72 {strides = array<i32>} : memref<8x32xf32, #tpu.memory_space<vmem>>, vector<8x32xf32>,
    return
  }
  func.func @transform_0(%arg0: i32) -> (i32, i32, i32) {
    %c0_i32 = arith.constant 0 : i32
    %c0_i32_0 = arith.constant 0 : i32
    %c0_i32_1 = arith.constant 0 : i32
    return %arg0, %c0_i32, %c0_i32_0 : i32, i32, i32
  }
  func.func @transform_1(%arg0: i32) -> (i32, i32) {
    %c0_i32 = arith.constant 0 : i32
    %c0_i32_0 = arith.constant 0 : i32
    %c0_i32_1 = arith.constant 0 : i32
    return %c0_i32, %c0_i32_0 : i32, i32
  }
  func.func @transform_2(%arg0: i32) -> (i32, i32, i32) {
    %c0_i32 = arith.constant 0 : i32
    %c0_i32_0 = arith.constant 0 : i32
    %c0_i32_1 = arith.constant 0 : i32
    %c0_i32_2 = arith.constant 0 : i32
    return %c0_i32, %c0_i32_0, %c0_i32_1 : i32, i32, i32
  }
  func.func @transform_3(%arg0: i32) -> (i32, i32) {
    %c0_i32 = arith.constant 0 : i32
    %c0_i32_0 = arith.constant 0 : i32
    %c0_i32_1 = arith.constant 0 : i32
    return %c0_i32, %c0_i32_0 : i32, i32
  }
  func.func @transform_4(%arg0: i32) -> (i32, i32) {
    %c0_i32 = arith.constant 0 : i32
    %c0_i32_0 = arith.constant 0 : i32
    %c0_i32_1 = arith.constant 0 : i32
    return %c0_i32, %c0_i32_0 : i32, i32
  }
  func.func @transform_5(%arg0: i32) -> (i32, i32) {
    %c0_i32 = arith.constant 0 : i32
    %c0_i32_0 = arith.constant 0 : i32
    %c0_i32_1 = arith.constant 0 : i32
    return %c0_i32, %c0_i32_0 : i32, i32
  }
  func.func @transform_6(%arg0: i32) -> (i32, i32) {
    %c0_i32 = arith.constant 0 : i32
    %c0_i32_0 = arith.constant 0 : i32
    %c0_i32_1 = arith.constant 0 : i32
    return %c0_i32, %c0_i32_0 : i32, i32
  }
  func.func @transform_7(%arg0: i32) -> (i32, i32) {
    %c0_i32 = arith.constant 0 : i32
    %c0_i32_0 = arith.constant 0 : i32
    %c0_i32_1 = arith.constant 0 : i32
    return %c0_i32, %c0_i32_0 : i32, i32
  }
  func.func @transform_8(%arg0: i32) -> (i32, i32) {
    %c0_i32 = arith.constant 0 : i32
    %c0_i32_0 = arith.constant 0 : i32
    %c0_i32_1 = arith.constant 0 : i32
    return %c0_i32, %c0_i32_0 : i32, i32
  }
  func.func @transform_9(%arg0: i32) -> (i32, i32) {
    %c0_i32 = arith.constant 0 : i32
    %c0_i32_0 = arith.constant 0 : i32
    %c0_i32_1 = arith.constant 0 : i32
    return %c0_i32, %c0_i32_0 : i32, i32
  }
  func.func @transform_10(%arg0: i32) -> (i32, i32) {
    %c0_i32 = arith.constant 0 : i32
    %c0_i32_0 = arith.constant 0 : i32
    %c0_i32_1 = arith.constant 0 : i32
    return %c0_i32, %c0_i32_0 : i32, i32
  }
  func.func @transform_11(%arg0: i32) -> (i32, i32) {
    %c0_i32 = arith.constant 0 : i32
    %c0_i32_0 = arith.constant 0 : i32
    %c0_i32_1 = arith.constant 0 : i32
    return %c0_i32, %c0_i32_0 : i32, i32
  }
  func.func @transform_12(%arg0: i32) -> (i32, i32) {
    %c0_i32 = arith.constant 0 : i32
    %c0_i32_0 = arith.constant 0 : i32
    %c0_i32_1 = arith.constant 0 : i32
    return %c0_i32, %c0_i32_0 : i32, i32
  }
  func.func @transform_13(%arg0: i32) -> (i32, i32) {
    %c0_i32 = arith.constant 0 : i32
    %c0_i32_0 = arith.constant 0 : i32
    %c0_i32_1 = arith.constant 0 : i32
    return %c0_i32, %c0_i32_0 : i32, i32
  }
  func.func @transform_14(%arg0: i32) -> (i32, i32) {
    %c0_i32 = arith.constant 0 : i32
    %c0_i32_0 = arith.constant 0 : i32
    %c0_i32_1 = arith.constant 0 : i32
    return %c0_i32, %c0_i32_0 : i32, i32
  }
  func.func @transform_15(%arg0: i32) -> (i32, i32, i32) {
    %c0_i32 = arith.constant 0 : i32
    %c0_i32_0 = arith.constant 0 : i32
    %c0_i32_1 = arith.constant 0 : i32
    return %arg0, %c0_i32, %c0_i32_0 : i32, i32, i32
  }
  func.func @transform_16(%arg0: i32) -> (i32, i32) {
    %c0_i32 = arith.constant 0 : i32
    %c0_i32_0 = arith.constant 0 : i32
    %c0_i32_1 = arith.constant 0 : i32
    return %c0_i32, %c0_i32_0 : i32, i32
  }
}

</mosaic_0001>

<bundles_post_ra>
// kernel: decoder_decode.1
= control target key start
LH: loop header
LB: loop body
LE: loop exit
PB: predicated region body
PF: predicated region fallthrough
CT: control target
= control target key end

     0   :  { %s4963_s0 = inlined_call_operand.vmem [shape: f32[4,8,32], index: 0, kind: input, shape index: {}]   ;;  %s4964_s1 = inlined_call_operand.vmem [shape: f32[8,32], index: 1, kind: input, shape index: {}]   ;;  %s4965_s2 = inlined_call_operand.vmem [shape: f32[8,16,32], index: 2, kind: input, shape index: {}]   ;;  %s4966_s3 = inlined_call_operand.vmem [shape: f32[32,32], index: 3, kind: input, shape index: {}]   ;;  %s4967_s4 = inlined_call_operand.vmem [shape: f32[1,32], index: 4, kind: input, shape index: {}]   ;;  %s4968_s5 = inlined_call_operand.vmem [shape: f32[1,32], index: 5, kind: input, shape index: {}]   ;;  %s4969_s6 = inlined_call_operand.vmem [shape: f32[32,128], index: 6, kind: input, shape index: {}]   ;;  %s4970_s7 = inlined_call_operand.vmem [shape: f32[1,96], index: 7, kind: input, shape index: {}]   ;;  %s4971_s8 = inlined_call_operand.vmem [shape: f32[32,96], index: 8, kind: input, shape index: {}]   ;;  %s4972_s9 = inlined_call_operand.vmem [shape: f32[32,96], index: 9, kind: input, shape index: {}]   ;;  %s4973_s10 = inlined_call_operand.vmem [shape: f32[1,96], index: 10, kind: input, shape index: {}]   ;;  %s4974_s11 = inlined_call_operand.vmem [shape: f32[32,64], index: 11, kind: input, shape index: {}]   ;;  %s4975_s12 = inlined_call_operand.vmem [shape: f32[32,64], index: 12, kind: input, shape index: {}]   ;;  %s4976_s13 = inlined_call_operand.vmem [shape: f32[32,64], index: 13, kind: input, shape index: {}]   ;;  %s4977_s14 = inlined_call_operand.vmem [shape: f32[1,64], index: 14, kind: input, shape index: {}]   ;;  %s4978_s15 = inlined_call_operand.hbm [shape: f32[4,8,64], index: 15, kind: output, shape index: {0}]   ;;  %s4979_s16 = inlined_call_operand.hbm [shape: f32[8,32], index: 16, kind: output, shape index: {1}]  }
   0x1   :  { %4989 = sst [smem:[#allocation17_spill]] %s4963_s0 }
   0x2   :  { %4990 = sst [smem:[#allocation18_spill]] %s4977_s14 }
   0x3   :  { %22 = vsyncpa [#allocation5], 0 }
   0x4   :  { %24 = vsyncpa [#allocation5 + $0x1], 0 }
   0x5   :  { %25 = vsyncpa [#allocation7], 0  ;;  %s3642_s21 = smov 0   ;;  %s3644_s22 = smov 0  }
   0x6   :  { %s3646_s23 = smov 0   ;;  %s3648_s24 = smov 0  }
   0x7 LB: > { %4991 = sst [smem:[#allocation10_spill]] %s3538_s21  ;;  %s3663_s25 = sadd.s32 4294967295, %s3550_s24   ;;  %s3550_s24 = sphi %s3648_s24, %s5009_s24   ;;  %s3546_s23 = sphi %s3646_s23, %s5011_s23   ;;  %s3542_s22 = sphi %s3644_s22, %s5013_s22   ;;  %s3538_s21 = sphi %s3642_s21, %s5012_s21  }
   0x8   : > { %4992 = sst [smem:[#allocation11_spill]] %s3546_s23  ;;  %s3289_s26 = sadd.s32 4294967294, %s3550_s24  }
   0x9   : > { %4993 = sst [smem:[#allocation12_spill]] %s3550_s24  ;;  %s3667_s27 = sadd.s32 1, %s3550_s24  }
   0xa   : > { %4994 = sst [smem:[#allocation13_spill]] %s3667_s27  ;;  %s358_s28 = sadd.s32 1, %s3546_s23 }
   0xb   : > { %s355_s29 = ssub.s32 %s3550_s24, %s3667_s27  ;;  %p368_p0 = scmp.ne.s32.totalorder %s3546_s23, %s3542_s22 }
   0xc   : > { %p356_p1 = scmp.eq.s32.totalorder %s355_s29, 0  ;;  %p369_p2 = scmp.eq.s32.totalorder %s3663_s25, 3 }
   0xd   : > { %p374_p3 = scmp.ne.s32.totalorder %s3542_s22, %s3538_s21  ;;  %p375_p4 = scmp.eq.s32.totalorder %s3289_s26, 3 }
   0xe   : > { %s3678_s30 = scalar_select %p356_p1, %s3546_s23, %s358_s28  }
   0xf   : > { %p3682_p5 = por %p369_p2, %p368_p0  ;;  %p3686_p6 = por %p375_p4, %p374_p3 }
  0x10   : > { %4995 = sst [smem:[#allocation14_spill]] %s3678_s30  ;;  %p3292_p7 = scmp.ge.s32.totalorder %s3550_s24, 1 }
  0x11   : > { %s4996_s0 = scalar_select %p3682_p5, 1, 0 }
  0x12   : > { %s4998_s17 = scalar_select %p3686_p6, 1, 0 }
  0x13   : > { %4997 = sst [smem:[#allocation15_spill]] %s4996_s0  ;;  %p463_p8 = scmp.lt.s32.totalorder %s3550_s24, 5 }
  0x14   : > { %4999 = sst [smem:[#allocation16_spill]] %s4998_s17 }
  0x15   : > { %p464_p9 = pnand %p3292_p7, %p463_p8 }
  0x16   : > { %s4986_s18 = sand.u32 (!%p464_p9), 1, %s3542_s22   ;;  %p512_p10 = scmp.lt.s32.totalorder (!%p464_p9), %s3663_s25, 3 }
  0x17   : > { %467 = sbr.rel (%p464_p9) target bundleno = 1996 (0x7cc), region = 80  ;;  %s3696_s19 = sshll.u32 (!%p464_p9), %s4986_s18, 3 }
  0x18   : > { %s5000_s30 = sld [smem:[#allocation17_spill]] (!%p464_p9)  ;;  %s509_s27 = scalar_lea.vmem (!%p464_p9), [#allocation4], %s3696_s19 }
  0x19   : > { %p3295_p11 = scmp.ne.s32.totalorder (!%p464_p9), %s3663_s25, 0 }
  0x1c   : > { %s513_s20 = scalar_select %p512_p10, %s3663_s25, 3 }
  0x1d   : > { %519 = sbr.rel (%p3295_p11) target bundleno = 376 (0x178), region = 84 }
  0x1e   : > { %s3294_s26 = sshll.u32 %s513_s20, 3 }
  0x1f   : > { %s3702_s23 = scalar_lea.vmem %s5000_s30, %s3294_s26 }
  0x22   : > { %v542_v0 = vld [vmem:[%s4966_s3 + $0x18] sm:$0xff]  ;;  %v541_v1 = vld [vmem:[%s4966_s3 + $0x10] sm:$0xff]  ;;  %v540_v2 = vld [vmem:[%s4966_s3 + $0x8] sm:$0xff]  ;;  %vm521_vm0 = vcmask 261120  }
  0x23   : > { %v3715_v3 = vand.u32 4294901760, %v542_v0  ;;  %v3717_v4 = vand.u32 4294901760, %v541_v1  ;;  %v3719_v5 = vand.u32 4294901760, %v540_v2  ;;  %v539_v6 = vld [vmem:[%s4966_s3] sm:$0xff]  ;;  %v532_v11 = vld [vmem:[%s4965_s2 + $0x48] sm:$0xff]  ;;  %v533_v13 = vld [vmem:[%s4965_s2 + $0x50] sm:$0xff] }
  0x24   : > { %v531_v7 = vld [vmem:[%s4965_s2 + $0x40] sm:$0xff]  ;;  %v3730_v9 = vand.u32 4294901760, %v539_v6  ;;  %v575_v19 = vsel %vm521_vm0, %v532_v11, 0  ;;  %v578_v21 = vsel %vm521_vm0, %v533_v13, 0  ;;  %v524_v36 = vld [vmem:[%s4965_s2 + $0x8] sm:$0xff]  ;;  %v525_v37 = vld [vmem:[%s4965_s2 + $0x10] sm:$0xff] }
  0x25   : > { %v520_v8 = vld [vmem:[%s4964_s1] sm:$0xff]  ;;  %v572_v10 = vsel %vm521_vm0, %v531_v7, 0  ;;  %3303 = vmatpush.msra.mxu2 %v3715_v3  ;;  %v757_v14 = vsub.f32 %v542_v0, %v3715_v3  ;;  %v763_v16 = vsub.f32 %v541_v1, %v3717_v4  ;;  %v769_v17 = vsub.f32 %v540_v2, %v3719_v5  ;;  %608 = vmatpush.msra.mxu0 %v3715_v3  ;;  %v534_v47 = vld [vmem:[%s4965_s2 + $0x58] sm:$0xff] }
  0x26   : > { %522 = vst.msk [vmem:[#allocation2] sm:$0xff] %vm521_vm0, %v520_v8  ;;  %v523_v12 = vld [vmem:[%s4965_s2] sm:$0xff]  ;;  %v3745_v15 = vand.u32 4294901760, %v572_v10  ;;  %v3751_v18 = vsub.f32 %v539_v6, %v3730_v9  ;;  %v3762_v27 = vand.u32 4294901760, %v575_v19  ;;  %v3775_v35 = vand.u32 4294901760, %v578_v21  ;;  %v526_v58 = vld [vmem:[%s4965_s2 + $0x18] sm:$0xff] }
  0x27   : > { %v548_v20 = vsel %vm521_vm0, %v523_v12, 0  ;;  %3304 = vmatpush.msra.mxu2 %v3717_v4  ;;  %v758_v22 = vand.u32 4294901760, %v757_v14  ;;  %v764_v24 = vand.u32 4294901760, %v763_v16  ;;  %v770_v25 = vand.u32 4294901760, %v769_v17  ;;  %610 = vmatpush.msra.mxu0 %v3717_v4  ;;  %v535_v2 = vld [vmem:[%s4965_s2 + $0x60] sm:$0xff] }
  0x28   : > { %v3758_v23 = vsub.f32 %v572_v10, %v3745_v15  ;;  %v776_v26 = vand.u32 4294901760, %v3751_v18  ;;  %v3764_v28 = vand.u32 4294901760, %v548_v20  ;;  %v3770_v33 = vsub.f32 %v575_v19, %v3762_v27  ;;  %v527_v12 = vld [vmem:[%s4965_s2 + $0x20] sm:$0xff]  ;;  %v536_v19 = vld [vmem:[%s4965_s2 + $0x68] sm:$0xff] }
  0x29   : > { %3305 = vmatpush.msra.mxu2 %v3719_v5  ;;  %v759_v29 = vsub.f32 %v757_v14, %v758_v22  ;;  %v765_v31 = vsub.f32 %v763_v16, %v764_v24  ;;  %v771_v32 = vsub.f32 %v769_v17, %v770_v25  ;;  %612 = vmatpush.msra.mxu0 %v3719_v5  ;;  %v551_v46 = vsel %vm521_vm0, %v524_v36, 0 }
  0x2a   : > { %v681_v30 = vand.u32 4294901760, %v3758_v23  ;;  %v3773_v34 = vsub.f32 %v548_v20, %v3764_v28  ;;  %v777_v41 = vsub.f32 %v3751_v18, %v776_v26  ;;  %v689_v42 = vand.u32 4294901760, %v3770_v33 }
  0x2b   : > { %3306 = vmatpush.msra.mxu2 %v3730_v9  ;;  %v760_v38 = vand.u32 4294901760, %v759_v29  ;;  %v766_v40 = vand.u32 4294901760, %v765_v31  ;;  %614 = vmatpush.msra.mxu0 %v3730_v9  ;;  %v772_v45 = vand.u32 4294901760, %v771_v32  ;;  %v554_v48 = vsel %vm521_vm0, %v525_v37, 0 }
  0x2c   : > { %v682_v39 = vsub.f32 %v3758_v23, %v681_v30  ;;  %v617_v43 = vand.u32 4294901760, %v3773_v34  ;;  %v3801_v50 = vand.u32 4294901760, %v551_v46  ;;  %v778_v51 = vand.u32 4294901760, %v777_v41 }
  0x2d   : > { %859 = vmatpush.msrb.mxu2 %v757_v14  ;;  %1082 = vmatpush.msrb.mxu0 %v758_v22  ;;  %v690_v52 = vsub.f32 %v3770_v33, %v689_v42  ;;  %v3807_v53 = vsub.f32 %v578_v21, %v3775_v35  ;;  %v3809_v54 = vand.u32 4294901760, %v554_v48  ;;  %v581_v57 = vsel %vm521_vm0, %v534_v47, 0  ;;  %v529_v47 = vld [vmem:[%s4965_s2 + $0x30] sm:$0xff] }
  0x2e   : > { %3307 = vmatpush.msra.mxu3 %v760_v38  ;;  %v683_v44 = vand.u32 4294901760, %v682_v39  ;;  %761 = vmatpush.msra.mxu1 %v760_v38  ;;  %v618_v49 = vsub.f32 %v3773_v34, %v617_v43  ;;  %v3812_v56 = vsub.f32 %v551_v46, %v3801_v50  ;;  %v3823_v63 = vand.u32 4294901760, %v581_v57  ;;  %v537_v38 = vld [vmem:[%s4965_s2 + $0x70] sm:$0xff] }
  0x2f   : > { %862 = vmatpush.msrb.mxu2 %v763_v16  ;;  %1086 = vmatpush.msrb.mxu0 %v764_v24  ;;  %v3820_v60 = vsub.f32 %v554_v48, %v3809_v54  ;;  %v691_v61 = vand.u32 4294901760, %v690_v52  ;;  %v697_v62 = vand.u32 4294901760, %v3807_v53  ;;  %v557_v0 = vsel %vm521_vm0, %v526_v58, 0  ;;  %v538_v58 = vld [vmem:[%s4965_s2 + $0x78] sm:$0xff] }
  0x30   : > { %684 = vmatmul.f32.vlgmr.msra.gmra.mxu2 %v683_v44  ;;  %3308 = vmatpush.msra.mxu3 %v766_v40  ;;  %v619_v55 = vand.u32 4294901760, %v618_v49  ;;  %v625_v59 = vand.u32 4294901760, %v3812_v56  ;;  %v3838_v8 = vand.u32 4294901760, %v557_v0  ;;  %v3847_v11 = vsub.f32 %v581_v57, %v3823_v63 }
  0x31   : > { %767 = vmatpush.msra.mxu1 %v766_v40  ;;  %865 = vmatpush.msrb.mxu2 %v769_v17  ;;  %v633_v7 = vand.u32 4294901760, %v3820_v60  ;;  %v698_v10 = vsub.f32 %v3807_v53, %v697_v62  ;;  %v590_v46 = vsel %vm521_vm0, %v537_v38, 0  ;;  %v566_v57 = vsel %vm521_vm0, %v529_v47, 0 }
  0x32   : > { %3309 = vmatpush.msra.mxu3 %v772_v45  ;;  %1090 = vmatpush.msrb.mxu0 %v770_v25  ;;  %v626_v1 = vsub.f32 %v3812_v56, %v625_v59  ;;  %v3859_v14 = vsub.f32 %v557_v0, %v3838_v8  ;;  %v705_v17 = vand.u32 4294901760, %v3847_v11  ;;  %v528_v25 = vld [vmem:[%s4965_s2 + $0x28] sm:$0xff] }
  0x33   : > { %773 = vmatpush.msra.mxu1 %v772_v45  ;;  %620 = vmatmul.f32.vlgmr.msra.gmra.mxu0 %v619_v55  ;;  %v634_v13 = vsub.f32 %v3820_v60, %v633_v7  ;;  %v699_v16 = vand.u32 4294901760, %v698_v10  ;;  %v563_v37 = vsel %vm521_vm0, %v528_v25, 0  ;;  %v3921_v55 = vand.u32 4294901760, %v590_v46 }
  0x34   : > { %3310 = vmatpush.msra.mxu3 %v778_v51  ;;  %868 = vmatpush.msrb.mxu2 %v3751_v18  ;;  %v627_v6 = vand.u32 4294901760, %v626_v1  ;;  %v560_v18 = vsel %vm521_vm0, %v527_v12, 0  ;;  %v641_v20 = vand.u32 4294901760, %v3859_v14  ;;  %v706_v22 = vsub.f32 %v3847_v11, %v705_v17 }
  0x35   : > { %813 = vmatmul.f32.vlgmr.msra.gmra.mxu3 %v3745_v15  ;;  %779 = vmatpush.msra.mxu1 %v778_v51  ;;  %v3874_v21 = vand.u32 4294901760, %v560_v18  ;;  %v3902_v41 = vand.u32 4294901760, %v563_v37  ;;  %v3930_v1 = vand.u32 4294901760, %v566_v57  ;;  %v593_v10 = vsel %vm521_vm0, %v538_v58, 0 }
  0x36   : > { %963 = vmatpush.msrb.mxu3 %v3715_v3  ;;  %781 = vmatmul.f32.vlgmr.msra.gmra.mxu1 %v3764_v28  ;;  %v707_v31 = vand.u32 4294901760, %v706_v22 }
  0x37   : > { %1173 = vmatpush.msrb.mxu1 %v3715_v3  ;;  %1094 = vmatpush.msrb.mxu0 %v776_v26  ;;  %v584_v3 = vsel %vm521_vm0, %v535_v2, 0  ;;  %v642_v26 = vsub.f32 %v3859_v14, %v641_v20  ;;  %v3890_v29 = vsub.f32 %v560_v18, %v3874_v21  ;;  %v3918_v49 = vsub.f32 %v563_v37, %v3902_v41 }
  0x38   : > { %692 = vmatmul.f32.gmra.mxu2 %v691_v61  ;;  %965 = vmatpush.msrb.mxu3 %v3717_v4 }
  0x39   : > { %1175 = vmatpush.msrb.mxu1 %v3717_v4  ;;  %v3863_v4 = vand.u32 4294901760, %v584_v3  ;;  %v643_v39 = vand.u32 4294901760, %v642_v26  ;;  %v649_v40 = vand.u32 4294901760, %v3890_v29  ;;  %v657_v0 = vand.u32 4294901760, %v3918_v49 }
  0x3a   : > { %967 = vmatpush.msrb.mxu3 %v3719_v5 }
  0x3b   : > { %628 = vmatmul.f32.gmra.mxu0 %v627_v6  ;;  %1177 = vmatpush.msrb.mxu1 %v3719_v5  ;;  %v635_v5 = vand.u32 4294901760, %v634_v13  ;;  %v3880_v24 = vsub.f32 %v584_v3, %v3863_v4  ;;  %v650_v48 = vsub.f32 %v3890_v29, %v649_v40  ;;  %v3936_v6 = vsub.f32 %v590_v46, %v3921_v55  ;;  %v530_v3 = vld [vmem:[%s4965_s2 + $0x38] sm:$0xff] }
  0x3c   : > { %969 = vmatpush.msrb.mxu3 %v3730_v9  ;;  %v658_v12 = vsub.f32 %v3918_v49, %v657_v0  ;;  %v664_v13 = vsub.f32 %v566_v57, %v3930_v1 }
  0x3d   : > { %817 = vmatmul.f32.gmra.mxu3 %v3762_v27  ;;  %1179 = vmatpush.msrb.mxu1 %v3730_v9  ;;  %v587_v9 = vsel %vm521_vm0, %v536_v19, 0  ;;  %v713_v32 = vand.u32 4294901760, %v3880_v24  ;;  %v651_v61 = vand.u32 4294901760, %v650_v48  ;;  %v729_v18 = vand.u32 4294901760, %v3936_v6 }
  0x3e   : > { %785 = vmatmul.f32.gmra.mxu1 %v3801_v50  ;;  %v3893_v36 = vand.u32 4294901760, %v587_v9  ;;  %v3947_v19 = vand.u32 4294901760, %v593_v10  ;;  %v659_v22 = vand.u32 4294901760, %v658_v12 }
  0x3f   : > { %v714_v44 = vsub.f32 %v3880_v24, %v713_v32  ;;  %v730_v26 = vsub.f32 %v3936_v6, %v729_v18 }
  0x40   : > { %700 = vmatmul.f32.gmra.mxu2 %v699_v16  ;;  %v3908_v45 = vsub.f32 %v587_v9, %v3893_v36  ;;  %v665_v9 = vand.u32 4294901760, %v664_v13 }
  0x41   : > { %v715_v51 = vand.u32 4294901760, %v714_v44 }
  0x42   : > { %v721_v52 = vand.u32 4294901760, %v3908_v45  ;;  %v666_v37 = vsub.f32 %v664_v13, %v665_v9 }
  0x43   : > { %636 = vmatmul.f32.gmra.mxu0 %v635_v5  ;;  %v569_v5 = vsel %vm521_vm0, %v530_v3, 0 }
  0x44   : > { %v722_v2 = vsub.f32 %v3908_v45, %v721_v52  ;;  %v671_v25 = vand.u32 4294901760, %v569_v5  ;;  %v667_v46 = vand.u32 4294901760, %v666_v37 }
  0x45   : > { %821 = vmatmul.f32.gmra.mxu3 %v3775_v35 }
  0x46   : > { %789 = vmatmul.f32.gmra.mxu1 %v3809_v54  ;;  %v723_v16 = vand.u32 4294901760, %v722_v2  ;;  %v672_v38 = vsub.f32 %v569_v5, %v671_v25 }
  0x48   : > { %708 = vmatmul.f32.gmra.mxu2 %v707_v31  ;;  %v3956_v31 = vsub.f32 %v593_v10, %v3947_v19  ;;  %v673_v47 = vand.u32 4294901760, %v672_v38 }
  0x4a   : > { %v737_v44 = vand.u32 4294901760, %v3956_v31 }
  0x4b   : > { %644 = vmatmul.f32.gmra.mxu0 %v643_v39  ;;  %v731_v39 = vand.u32 4294901760, %v730_v26 }
  0x4c   : > { %v738_v48 = vsub.f32 %v3956_v31, %v737_v44 }
  0x4d   : > { %825 = vmatmul.f32.gmra.mxu3 %v3823_v63 }
  0x4e   : > { %793 = vmatmul.f32.gmra.mxu1 %v3838_v8  ;;  %v739_v57 = vand.u32 4294901760, %v738_v48 }
  0x50   : > { %716 = vmatmul.f32.gmra.mxu2 %v715_v51  ;;  %v674_v51 = vsub.f32 %v672_v38, %v673_v47 }
  0x52   : > { %v675_v58 = vand.u32 4294901760, %v674_v51 }
  0x53   : > { %652 = vmatmul.f32.gmra.mxu0 %v651_v61 }
  0x55   : > { %829 = vmatmul.f32.gmra.mxu3 %v3863_v4 }
  0x56   : > { %797 = vmatmul.f32.gmra.mxu1 %v3874_v21 }
  0x58   : > { %724 = vmatmul.f32.gmra.mxu2 %v723_v16 }
  0x5b   : > { %660 = vmatmul.f32.gmra.mxu0 %v659_v22 }
  0x5d   : > { %833 = vmatmul.f32.gmra.mxu3 %v3893_v36 }
  0x5e   : > { %801 = vmatmul.f32.gmra.mxu1 %v3902_v41 }
  0x60   : > { %732 = vmatmul.f32.gmra.mxu2 %v731_v39 }
  0x63   : > { %668 = vmatmul.f32.gmra.mxu0 %v667_v46 }
  0x65   : > { %837 = vmatmul.f32.gmra.mxu3 %v3921_v55 }
  0x66   : > { %805 = vmatmul.f32.gmra.mxu1 %v3930_v1 }
  0x68   : > { %740 = vmatmul.f32.gmra.mxu2 %v739_v57 }
  0x6b   : > { %676 = vmatmul.f32.gmra.mxu0 %v675_v58 }
  0x6d   : > { %841 = vmatmul.f32.gmra.mxu3 %v3947_v19 }
  0x6e   : > { %809 = vmatmul.f32.gmra.mxu1 %v671_v25 }
  0x70   : > { %871 = vmatmul.f32.vlgmr.msrb.gmra.mxu2 %v3773_v34 }
  0x73   : > { %1096 = vmatmul.f32.vlgmr.msrb.gmra.mxu0 %v3764_v28 }
  0x75   : > { %973 = vmatmul.f32.vlgmr.msrb.gmra.mxu3 %v617_v43 }
  0x76   : > { %1181 = vmatmul.f32.vlgmr.msrb.gmra.mxu1 %v3764_v28  ;;  %v4003_v28 = vld [vmem:[%s4967_s4] ss:$0 sm:$0xff] }
  0x78   : > { %876 = vmatmul.f32.gmra.mxu2 %v3812_v56 }
  0x7b   : > { %1100 = vmatmul.f32.gmra.mxu0 %v3801_v50 }
  0x7d   : > { %979 = vmatmul.f32.gmra.mxu3 %v625_v59 }
  0x7e   : > { %1185 = vmatmul.f32.gmra.mxu1 %v3801_v50 }
  0x80   : > { %881 = vmatmul.f32.gmra.mxu2 %v3820_v60 }
  0x83   : > { %1104 = vmatmul.f32.gmra.mxu0 %v3809_v54 }
  0x85   : > { %985 = vmatmul.f32.gmra.mxu3 %v633_v7 }
  0x86   : > { %1189 = vmatmul.f32.gmra.mxu1 %v3809_v54 }
  0x88   : > { %886 = vmatmul.f32.gmra.mxu2 %v3859_v14 }
  0x8b   : > { %1108 = vmatmul.f32.gmra.mxu0 %v3838_v8 }
  0x8d   : > { %991 = vmatmul.f32.gmra.mxu3 %v641_v20 }
  0x8e   : > { %1193 = vmatmul.f32.gmra.mxu1 %v3838_v8 }
  0x90   : > { %891 = vmatmul.f32.gmra.mxu2 %v3890_v29 }
  0x93   : > { %1112 = vmatmul.f32.gmra.mxu0 %v3874_v21 }
  0x95   : > { %997 = vmatmul.f32.gmra.mxu3 %v649_v40 }
  0x96   : > { %1197 = vmatmul.f32.gmra.mxu1 %v3874_v21 }
  0x98   : > { %896 = vmatmul.f32.gmra.mxu2 %v3918_v49 }
  0x9b   : > { %1116 = vmatmul.f32.gmra.mxu0 %v3902_v41 }
  0x9d   : > { %1003 = vmatmul.f32.gmra.mxu3 %v657_v0 }
  0x9e   : > { %1201 = vmatmul.f32.gmra.mxu1 %v3902_v41 }
  0xa0   : > { %901 = vmatmul.f32.gmra.mxu2 %v664_v13 }
  0xa3   : > { %1120 = vmatmul.f32.gmra.mxu0 %v3930_v1 }
  0xa5   : > { %1009 = vmatmul.f32.gmra.mxu3 %v665_v9 }
  0xa6   : > { %1205 = vmatmul.f32.gmra.mxu1 %v3930_v1 }
  0xa8   : > { %906 = vmatmul.f32.gmra.mxu2 %v672_v38 }
  0xab   : > { %1124 = vmatmul.f32.gmra.mxu0 %v671_v25 }
  0xad   : > { %1015 = vmatmul.f32.gmra.mxu3 %v673_v47 }
  0xae   : > { %1209 = vmatmul.f32.gmra.mxu1 %v671_v25 }
  0xb0   : > { %911 = vmatmul.f32.gmra.mxu2 %v3758_v23  ;;  %v4005_v34 = vpop.f32.mrf.mxu0 }
  0xb3   : > { %v685_v43 = vpop.f32.mrf.mxu2  ;;  %v4007_v50 = vpop.f32.mrf.mxu1  ;;  %1128 = vmatmul.f32.gmra.mxu0 %v3745_v15 }
  0xb4   : > { %v686_v54 = vadd.f32 %v4003_v28, %v685_v43 }
  0xb5   : > { %1021 = vmatmul.f32.gmra.mxu3 %v681_v30 }
  0xb6   : > { %1213 = vmatmul.f32.gmra.mxu1 %v3745_v15 }
  0xb8   : > { %916 = vmatmul.f32.gmra.mxu2 %v3770_v33  ;;  %v814_v56 = vpop.f32.mrf.mxu3  ;;  %v4015_v59 = vpop.f32.mrf.mxu0 }
  0xb9   : > { %v4017_v60 = vadd.f32 %v814_v56, %v686_v54 }
  0xbb   : > { %v693_v7 = vpop.f32.mrf.mxu2  ;;  %v4019_v8 = vpop.f32.mrf.mxu1  ;;  %1132 = vmatmul.f32.gmra.mxu0 %v3762_v27 }
  0xbc   : > { %v694_v14 = vadd.f32 %v4003_v28, %v693_v7 }
  0xbd   : > { %1027 = vmatmul.f32.gmra.mxu3 %v689_v42 }
  0xbe   : > { %1217 = vmatmul.f32.gmra.mxu1 %v3762_v27 }
  0xc0   : > { %921 = vmatmul.f32.gmra.mxu2 %v3807_v53  ;;  %v818_v15 = vpop.f32.mrf.mxu3  ;;  %v4027_v23 = vpop.f32.mrf.mxu0 }
  0xc1   : > { %v4029_v30 = vadd.f32 %v818_v15, %v694_v14 }
  0xc3   : > { %v701_v20 = vpop.f32.mrf.mxu2  ;;  %v4031_v21 = vpop.f32.mrf.mxu1  ;;  %1136 = vmatmul.f32.gmra.mxu0 %v3775_v35 }
  0xc4   : > { %v702_v29 = vadd.f32 %v4003_v28, %v701_v20 }
  0xc5   : > { %1033 = vmatmul.f32.gmra.mxu3 %v697_v62 }
  0xc6   : > { %1221 = vmatmul.f32.gmra.mxu1 %v3775_v35 }
  0xc8   : > { %926 = vmatmul.f32.gmra.mxu2 %v3847_v11  ;;  %v822_v27 = vpop.f32.mrf.mxu3  ;;  %v4039_v33 = vpop.f32.mrf.mxu0 }
  0xc9   : > { %v4041_v42 = vadd.f32 %v822_v27, %v702_v29 }
  0xcb   : > { %v709_v40 = vpop.f32.mrf.mxu2  ;;  %v4043_v41 = vpop.f32.mrf.mxu1  ;;  %1140 = vmatmul.f32.gmra.mxu0 %v3823_v63 }
  0xcc   : > { %v710_v49 = vadd.f32 %v4003_v28, %v709_v40  ;;  %v646_v40 = vadd.f32 %v4003_v28, %v4039_v33 }
  0xcd   : > { %1039 = vmatmul.f32.gmra.mxu3 %v705_v17 }
  0xce   : > { %1225 = vmatmul.f32.gmra.mxu1 %v3823_v63 }
  0xd0   : > { %931 = vmatmul.f32.gmra.mxu2 %v3880_v24  ;;  %v826_v35 = vpop.f32.mrf.mxu3  ;;  %v4051_v53 = vpop.f32.mrf.mxu0 }
  0xd1   : > { %v4053_v62 = vadd.f32 %v826_v35, %v710_v49 }
  0xd3   : > { %v717_v61 = vpop.f32.mrf.mxu2  ;;  %v4055_v0 = vpop.f32.mrf.mxu1  ;;  %1144 = vmatmul.f32.gmra.mxu0 %v3863_v4 }
  0xd4   : > { %v718_v1 = vadd.f32 %v4003_v28, %v717_v61 }
  0xd5   : > { %1045 = vmatmul.f32.gmra.mxu3 %v713_v32 }
  0xd6   : > { %1229 = vmatmul.f32.gmra.mxu1 %v3863_v4 }
  0xd8   : > { %936 = vmatmul.f32.gmra.mxu2 %v3908_v45  ;;  %v830_v63 = vpop.f32.mrf.mxu3  ;;  %v4063_v11 = vpop.f32.mrf.mxu0 }
  0xd9   : > { %v4065_v17 = vadd.f32 %v830_v63, %v718_v1 }
  0xdb   : > { %v725_v2 = vpop.f32.mrf.mxu2  ;;  %v4067_v10 = vpop.f32.mrf.mxu1  ;;  %1148 = vmatmul.f32.gmra.mxu0 %v3893_v36 }
  0xdc   : > { %v726_v3 = vadd.f32 %v4003_v28, %v725_v2 }
  0xdd   : > { %1051 = vmatmul.f32.gmra.mxu3 %v721_v52 }
  0xde   : > { %1233 = vmatmul.f32.gmra.mxu1 %v3893_v36 }
  0xe0   : > { %941 = vmatmul.f32.gmra.mxu2 %v3936_v6  ;;  %v834_v4 = vpop.f32.mrf.mxu3  ;;  %v4075_v24 = vpop.f32.mrf.mxu0 }
  0xe1   : > { %v4077_v32 = vadd.f32 %v834_v4, %v726_v3  ;;  %v654_v4 = vadd.f32 %v4003_v28, %v4051_v53 }
  0xe3   : > { %v733_v12 = vpop.f32.mrf.mxu2  ;;  %v4079_v13 = vpop.f32.mrf.mxu1  ;;  %1152 = vmatmul.f32.gmra.mxu0 %v3921_v55  ;;  %v799_v33 = vadd.f32 %v4055_v0, %v654_v4 }
  0xe4   : > { %v734_v16 = vadd.f32 %v4003_v28, %v733_v12 }
  0xe5   : > { %1057 = vmatmul.f32.gmra.mxu3 %v729_v18  ;;  %v622_v18 = vadd.f32 %v4003_v28, %v4005_v34 }
  0xe6   : > { %1237 = vmatmul.f32.gmra.mxu1 %v3921_v55 }
  0xe7   : > { %v783_v38 = vadd.f32 %v4007_v50, %v622_v18  ;;  %v638_v50 = vadd.f32 %v4003_v28, %v4027_v23  ;;  %v795_v23 = vadd.f32 %v4043_v41, %v646_v40  ;;  %v662_v18 = vadd.f32 %v4003_v28, %v4063_v11 }
  0xe8   : > { %946 = vmatmul.f32.gmra.mxu2 %v3956_v31  ;;  %v838_v36 = vpop.f32.mrf.mxu3  ;;  %v4087_v45 = vpop.f32.mrf.mxu0  ;;  %v630_v31 = vadd.f32 %v4003_v28, %v4015_v59 }
  0xe9   : > { %v4089_v52 = vadd.f32 %v838_v36, %v734_v16  ;;  %v791_v59 = vadd.f32 %v4031_v21, %v638_v50  ;;  %v803_v53 = vadd.f32 %v4067_v10, %v662_v18 }
  0xea   : > { %v787_v57 = vadd.f32 %v4019_v8, %v630_v31 }
  0xeb   : > { %v741_v5 = vpop.f32.mrf.mxu2  ;;  %v4091_v22 = vpop.f32.mrf.mxu1  ;;  %1156 = vmatmul.f32.gmra.mxu0 %v3947_v19 }
  0xec   : > { %v742_v9 = vadd.f32 %v4003_v28, %v741_v5 }
  0xed   : > { %1063 = vmatmul.f32.gmra.mxu3 %v737_v44 }
  0xee   : > { %1241 = vmatmul.f32.gmra.mxu1 %v3947_v19 }
  0xf0   : > { %v842_v55 = vpop.f32.mrf.mxu3  ;;  %v1097_v6 = vpop.f32.mrf.mxu0 }
  0xf1   : > { %v4100_v25 = vadd.f32 %v842_v55, %v742_v9 }
  0xf3   : > { %v872_v26 = vpop.f32.mrf.mxu2  ;;  %v1182_v37 = vpop.f32.mrf.mxu1 }
  0xf4   : > { %v873_v39 = vadd.f32 %v872_v26, %v783_v38 }
  0xf8   : > { %v974_v46 = vpop.f32.mrf.mxu3  ;;  %v1101_v47 = vpop.f32.mrf.mxu0 }
  0xf9   : > { %v975_v44 = vadd.f32 %v974_v46, %v873_v39 }
  0xfb   : > { %v877_v48 = vpop.f32.mrf.mxu2  ;;  %v1098_v19 = vadd.f32 %v1097_v6, %v975_v44  ;;  %v1186_v51 = vpop.f32.mrf.mxu1  ;;  %v670_v44 = vadd.f32 %v4003_v28, %v4075_v24 }
  0xfc   : > { %v878_v34 = vadd.f32 %v877_v48, %v787_v57 }
  0xfd   : > { %v1183_v58 = vadd.f32 %v1182_v37, %v1098_v19  ;;  %v807_v11 = vadd.f32 %v4079_v13, %v670_v44 }
  0xff   : > { %1245 = vst.msk [vmem:[#allocation3] sm:$0xff] %vm521_vm0, %v1183_v58 }
 0x100   : > { %v980_v43 = vpop.f32.mrf.mxu3  ;;  %v1105_v54 = vpop.f32.mrf.mxu0 }
 0x101   : > { %v981_v56 = vadd.f32 %v980_v43, %v878_v34 }
 0x103   : > { %v882_v7 = vpop.f32.mrf.mxu2  ;;  %v1102_v14 = vadd.f32 %v1101_v47, %v981_v56  ;;  %v1190_v15 = vpop.f32.mrf.mxu1 }
 0x104   : > { %v883_v29 = vadd.f32 %v882_v7, %v791_v59 }
 0x105   : > { %v1187_v20 = vadd.f32 %v1186_v51, %v1102_v14 }
 0x107   : > { %1246 = vst.msk [vmem:[#allocation3 + $0x8] sm:$0xff] %vm521_vm0, %v1187_v20 }
 0x108   : > { %v986_v8 = vpop.f32.mrf.mxu3  ;;  %v1109_v27 = vpop.f32.mrf.mxu0 }
 0x109   : > { %v987_v49 = vadd.f32 %v986_v8, %v883_v29 }
 0x10b   : > { %v887_v35 = vpop.f32.mrf.mxu2  ;;  %v1106_v61 = vadd.f32 %v1105_v54, %v987_v49  ;;  %v1194_v1 = vpop.f32.mrf.mxu1  ;;  %v678_v54 = vadd.f32 %v4003_v28, %v4087_v45 }
 0x10c   : > { %v888_v2 = vadd.f32 %v887_v35, %v795_v23 }
 0x10d   : > { %v1191_v63 = vadd.f32 %v1190_v15, %v1106_v61  ;;  %v811_v24 = vadd.f32 %v4091_v22, %v678_v54 }
 0x10f   : > { %1247 = vst.msk [vmem:[#allocation3 + $0x10] sm:$0xff] %vm521_vm0, %v1191_v63 }
 0x110   : > { %v992_v21 = vpop.f32.mrf.mxu3  ;;  %v1113_v3 = vpop.f32.mrf.mxu0 }
 0x111   : > { %v993_v12 = vadd.f32 %v992_v21, %v888_v2 }
 0x113   : > { %v892_v16 = vpop.f32.mrf.mxu2  ;;  %v1110_v36 = vadd.f32 %v1109_v27, %v993_v12  ;;  %v1198_v5 = vpop.f32.mrf.mxu1 }
 0x114   : > { %v893_v55 = vadd.f32 %v892_v16, %v799_v33 }
 0x115   : > { %v1195_v9 = vadd.f32 %v1194_v1, %v1110_v36 }
 0x117   : > { %1248 = vst.msk [vmem:[#allocation3 + $0x18] sm:$0xff] %vm521_vm0, %v1195_v9 }
 0x118   : > { %v998_v41 = vpop.f32.mrf.mxu3  ;;  %v1117_v6 = vpop.f32.mrf.mxu0 }
 0x119   : > { %v999_v26 = vadd.f32 %v998_v41, %v893_v55 }
 0x11b   : > { %v897_v37 = vpop.f32.mrf.mxu2  ;;  %v1114_v38 = vadd.f32 %v1113_v3, %v999_v26  ;;  %v1202_v39 = vpop.f32.mrf.mxu1 }
 0x11c   : > { %v898_v47 = vadd.f32 %v897_v37, %v803_v53 }
 0x11d   : > { %v1199_v46 = vadd.f32 %v1198_v5, %v1114_v38 }
 0x11f   : > { %1249 = vst.msk [vmem:[#allocation3 + $0x20] sm:$0xff] %vm521_vm0, %v1199_v46 }
 0x120   : > { %v1004_v0 = vpop.f32.mrf.mxu3  ;;  %v1121_v31 = vpop.f32.mrf.mxu0 }
 0x121   : > { %v1005_v48 = vadd.f32 %v1004_v0, %v898_v47 }
 0x123   : > { %v902_v19 = vpop.f32.mrf.mxu2  ;;  %v1118_v51 = vadd.f32 %v1117_v6, %v1005_v48  ;;  %v1206_v57 = vpop.f32.mrf.mxu1 }
 0x124   : > { %v903_v34 = vadd.f32 %v902_v19, %v807_v11 }
 0x125   : > { %v1203_v58 = vadd.f32 %v1202_v39, %v1118_v51 }
 0x127   : > { %1250 = vst.msk [vmem:[#allocation3 + $0x28] sm:$0xff] %vm521_vm0, %v1203_v58 }
 0x128   : > { %v1010_v10 = vpop.f32.mrf.mxu3  ;;  %v1125_v43 = vpop.f32.mrf.mxu0 }
 0x129   : > { %v1011_v50 = vadd.f32 %v1010_v10, %v903_v34 }
 0x12b   : > { %v907_v56 = vpop.f32.mrf.mxu2  ;;  %v1122_v7 = vadd.f32 %v1121_v31, %v1011_v50  ;;  %v1210_v14 = vpop.f32.mrf.mxu1 }
 0x12c   : > { %v908_v59 = vadd.f32 %v907_v56, %v811_v24 }
 0x12d   : > { %v1207_v15 = vadd.f32 %v1206_v57, %v1122_v7 }
 0x12f   : > { %1251 = vst.msk [vmem:[#allocation3 + $0x30] sm:$0xff] %vm521_vm0, %v1207_v15 }
 0x130   : > { %v1016_v13 = vpop.f32.mrf.mxu3  ;;  %v1129_v20 = vpop.f32.mrf.mxu0 }
 0x131   : > { %v1017_v29 = vadd.f32 %v1016_v13, %v908_v59 }
 0x133   : > { %v912_v8 = vpop.f32.mrf.mxu2  ;;  %v1126_v27 = vadd.f32 %v1125_v43, %v1017_v29  ;;  %v1214_v40 = vpop.f32.mrf.mxu1 }
 0x134   : > { %v913_v35 = vadd.f32 %v912_v8, %v4017_v60 }
 0x135   : > { %v1211_v49 = vadd.f32 %v1210_v14, %v1126_v27 }
 0x137   : > { %1252 = vst.msk [vmem:[#allocation3 + $0x38] sm:$0xff] %vm521_vm0, %v1211_v49 }
 0x138   : > { %v1022_v28 = vpop.f32.mrf.mxu3  ;;  %v1133_v45 = vpop.f32.mrf.mxu0 }
 0x139   : > { %v1023_v61 = vadd.f32 %v1022_v28, %v913_v35 }
 0x13b   : > { %v917_v1 = vpop.f32.mrf.mxu2  ;;  %v1130_v22 = vadd.f32 %v1129_v20, %v1023_v61  ;;  %v1218_v23 = vpop.f32.mrf.mxu1 }
 0x13c   : > { %v918_v2 = vadd.f32 %v917_v1, %v4029_v30 }
 0x13d   : > { %v1215_v63 = vadd.f32 %v1214_v40, %v1130_v22 }
 0x13f   : > { %1253 = vst.msk [vmem:[#allocation3 + $0x40] sm:$0xff] %vm521_vm0, %v1215_v63 }
 0x140   : > { %v1028_v21 = vpop.f32.mrf.mxu3  ;;  %v1137_v3 = vpop.f32.mrf.mxu0 }
 0x141   : > { %v1029_v4 = vadd.f32 %v1028_v21, %v918_v2 }
 0x143   : > { %v922_v12 = vpop.f32.mrf.mxu2  ;;  %v1134_v16 = vadd.f32 %v1133_v45, %v1029_v4  ;;  %v1222_v36 = vpop.f32.mrf.mxu1 }
 0x144   : > { %v923_v5 = vadd.f32 %v922_v12, %v4041_v42 }
 0x145   : > { %v1219_v60 = vadd.f32 %v1218_v23, %v1134_v16 }
 0x147   : > { %1254 = vst.msk [vmem:[#allocation3 + $0x48] sm:$0xff] %vm521_vm0, %v1219_v60 }
 0x148   : > { %v1034_v33 = vpop.f32.mrf.mxu3  ;;  %v1141_v9 = vpop.f32.mrf.mxu0 }
 0x149   : > { %v1035_v55 = vadd.f32 %v1034_v33, %v923_v5 }
 0x14b   : > { %v927_v41 = vpop.f32.mrf.mxu2  ;;  %v1138_v6 = vadd.f32 %v1137_v3, %v1035_v55  ;;  %v1226_v18 = vpop.f32.mrf.mxu1 }
 0x14c   : > { %v928_v26 = vadd.f32 %v927_v41, %v4053_v62 }
 0x14d   : > { %v1223_v30 = vadd.f32 %v1222_v36, %v1138_v6 }
 0x14f   : > { %1255 = vst.msk [vmem:[#allocation3 + $0x50] sm:$0xff] %vm521_vm0, %v1223_v30 }
 0x150   : > { %v1040_v37 = vpop.f32.mrf.mxu3  ;;  %v1145_v39 = vpop.f32.mrf.mxu0 }
 0x151   : > { %v1041_v38 = vadd.f32 %v1040_v37, %v928_v26 }
 0x153   : > { %v932_v53 = vpop.f32.mrf.mxu2  ;;  %v1142_v46 = vadd.f32 %v1141_v9, %v1041_v38  ;;  %v1230_v47 = vpop.f32.mrf.mxu1 }
 0x154   : > { %v933_v0 = vadd.f32 %v932_v53, %v4065_v17 }
 0x155   : > { %v1227_v42 = vadd.f32 %v1226_v18, %v1142_v46 }
 0x157   : > { %1256 = vst.msk [vmem:[#allocation3 + $0x58] sm:$0xff] %vm521_vm0, %v1227_v42 }
 0x158   : > { %v1046_v31 = vpop.f32.mrf.mxu3  ;;  %v1149_v51 = vpop.f32.mrf.mxu0 }
 0x159   : > { %v1047_v44 = vadd.f32 %v1046_v31, %v933_v0 }
 0x15b   : > { %v937_v48 = vpop.f32.mrf.mxu2  ;;  %v1146_v19 = vadd.f32 %v1145_v39, %v1047_v44  ;;  %v1234_v62 = vpop.f32.mrf.mxu1 }
 0x15c   : > { %v938_v11 = vadd.f32 %v937_v48, %v4077_v32 }
 0x15d   : > { %v1231_v57 = vadd.f32 %v1230_v47, %v1146_v19 }
 0x15f   : > { %1257 = vst.msk [vmem:[#allocation3 + $0x60] sm:$0xff] %vm521_vm0, %v1231_v57 }
 0x160   : > { %v1052_v58 = vpop.f32.mrf.mxu3  ;;  %v1153_v50 = vpop.f32.mrf.mxu0 }
 0x161   : > { %v1053_v34 = vadd.f32 %v1052_v58, %v938_v11 }
 0x163   : > { %v942_v10 = vpop.f32.mrf.mxu2  ;;  %v1150_v43 = vadd.f32 %v1149_v51, %v1053_v34  ;;  %v1238_v7 = vpop.f32.mrf.mxu1 }
 0x164   : > { %v943_v17 = vadd.f32 %v942_v10, %v4089_v52 }
 0x165   : > { %v1235_v54 = vadd.f32 %v1234_v62, %v1150_v43 }
 0x167   : > { %1258 = vst.msk [vmem:[#allocation3 + $0x68] sm:$0xff] %vm521_vm0, %v1235_v54 }
 0x168   : > { %v1058_v56 = vpop.f32.mrf.mxu3  ;;  %v1157_v20 = vpop.f32.mrf.mxu0 }
 0x169   : > { %v1059_v14 = vadd.f32 %v1058_v56, %v943_v17 }
 0x16b   : > { %v1154_v24 = vadd.f32 %v1153_v50, %v1059_v14  ;;  %v947_v15 = vpop.f32.mrf.mxu2  ;;  %v1242_v8 = vpop.f32.mrf.mxu1 }
 0x16c   : > { %v948_v32 = vadd.f32 %v947_v15, %v4100_v25 }
 0x16d   : > { %v1239_v59 = vadd.f32 %v1238_v7, %v1154_v24 }
 0x16f   : > { %1259 = vst.msk [vmem:[#allocation3 + $0x70] sm:$0xff] %vm521_vm0, %v1239_v59 }
 0x170   : > { %v1064_v13 = vpop.f32.mrf.mxu3 }
 0x171   : > { %v1065_v29 = vadd.f32 %v1064_v13, %v948_v32 }
 0x173   : > { %v1158_v27 = vadd.f32 %v1157_v20, %v1065_v29 }
 0x175   : > { %v1243_v40 = vadd.f32 %v1242_v8, %v1158_v27 }
 0x177   : > { %1260 = vst.msk [vmem:[#allocation3 + $0x78] sm:$0xff] %vm521_vm0, %v1243_v40 }
 0x178 PF: > { %v1286_v52 = vld [vmem:[%s4976_s13 + $0x18] sm:$0xff]  ;;  %v1285_v25 = vld [vmem:[%s4976_s13 + $0x10] sm:$0xff]  ;;  %v1284_v49 = vld [vmem:[%s4976_s13 + $0x8] sm:$0xff]  ;;  %vm1287_vm1 = vcmask 261120   ;;  %vm1836_vm2 = vcmask 130112   ;;  %vm1859_vm3 = vcmask 1041409  }
 0x179   : > { %v4157_v35 = vand.u32 4294901760, %v1286_v52  ;;  %v4159_v28 = vand.u32 4294901760, %v1285_v25  ;;  %v4161_v45 = vand.u32 4294901760, %v1284_v49  ;;  %v1283_v61 = vld [vmem:[%s4976_s13] sm:$0xff]  ;;  %v1479_v22 = vld [vmem:[%s4969_s6 + $0x18] sm:$0xff]  ;;  %v1478_v21 = vld [vmem:[%s4969_s6 + $0x10] sm:$0xff] }
 0x17a   : > { %v1261_v1 = vld [vmem:[%s3702_s23] sm:$0xff]  ;;  %v4170_v23 = vand.u32 4294901760, %v1283_v61  ;;  %v4173_v2 = vand.u32 4294901760, %v1479_v22  ;;  %v1477_v3 = vld [vmem:[%s4969_s6 + $0x8] sm:$0xff]  ;;  %v4196_v33 = vand.u32 4294901760, %v1478_v21  ;;  %vm1861_vm4 = vcmask 1042434  }
 0x17b   : > { %v1289_v63 = vsel %vm1287_vm1, %v1261_v1, 0  ;;  %1304 = vmatpush.msra.mxu0 %v4157_v35  ;;  %v1333_v4 = vsub.f32 %v1286_v52, %v4157_v35  ;;  %1404 = vmatpush.msra.mxu3 %v4157_v35  ;;  %v1339_v12 = vsub.f32 %v1285_v25, %v4159_v28  ;;  %v4186_v16 = vsub.f32 %v1284_v49, %v4161_v45  ;;  %v1476_v44 = vld [vmem:[%s4969_s6] sm:$0xff]  ;;  %s3553_s21 = smov 32   ;;  %s3554_s30 = smov 96  }
 0x17c   : > { %v4188_v36 = vand.u32 4294901760, %v1289_v63  ;;  %v4191_v60 = vsub.f32 %v1283_v61, %v4170_v23  ;;  %v4194_v5 = vsub.f32 %v1479_v22, %v4173_v2  ;;  %v4198_v9 = vand.u32 4294901760, %v1477_v3  ;;  %v1262_v48 = vld [vmem:[#allocation2] sm:$0xff]  ;;  %s3555_s18 = smov 64   ;;  %s3217_s23 = sshll.u32 %s4979_s16, 4  ;;  %s3218_s23 = int_to_ptr.hbm [resolvable:$true] %s3217_s23 }
 0x17d   : > { %1375 = vmatpush.msra.mxu2 %v1333_v4  ;;  %1306 = vmatpush.msra.mxu0 %v4159_v28  ;;  %v1334_v55 = vand.u32 4294901760, %v1333_v4  ;;  %v1340_v41 = vand.u32 4294901760, %v1339_v12  ;;  %v1346_v18 = vand.u32 4294901760, %v4186_v16  ;;  %v4209_v37 = vsub.f32 %v1478_v21, %v4196_v33  ;;  %s3298_s26 = sshll.u32 %s3663_s25, 3 }
 0x17e   : > { %v4202_v6 = vsub.f32 %v1289_v63, %v4188_v36  ;;  %1406 = vmatpush.msra.mxu3 %v4159_v28  ;;  %v1526_v30 = vand.u32 4294901760, %v4194_v5  ;;  %v1352_v26 = vand.u32 4294901760, %v4191_v60  ;;  %v4212_v38 = vsub.f32 %v1477_v3, %v4198_v9  ;;  %s3201_s20 = scalar_lea.hbm %s4978_s15, %s3298_s26 }
 0x17f   : > { %1378 = vmatpush.msra.mxu2 %v1339_v12  ;;  %1308 = vmatpush.msra.mxu0 %v4161_v45  ;;  %v1335_v39 = vsub.f32 %v1333_v4, %v1334_v55  ;;  %v1341_v53 = vsub.f32 %v1339_v12, %v1340_v41  ;;  %v1347_v47 = vsub.f32 %v4186_v16, %v1346_v18  ;;  %v1532_v0 = vand.u32 4294901760, %v4209_v37  ;;  %s3205_s0 = sshll.u32 %s3201_s20, 4  ;;  %s3504_s20 = scalar_lea.hbm %s4978_s15, 32  ;;  %s3206_s0 = int_to_ptr.hbm [resolvable:$true] %s3205_s0 }
 0x180   : > { %v4216_v46 = vand.u32 4294901760, %v4202_v6  ;;  %1408 = vmatpush.msra.mxu3 %v4161_v45  ;;  %v1527_v42 = vsub.f32 %v4194_v5, %v1526_v30  ;;  %v1538_v31 = vand.u32 4294901760, %v4212_v38  ;;  %v1353_v62 = vsub.f32 %v4191_v60, %v1352_v26  ;;  %s3498_s26 = sshra.s32 %s3206_s0, 4  ;;  %s3499_s26 = int_to_ptr.hbm [resolvable:$true] %s3498_s26 }
 0x181   : > { %v1336_v19 = vand.u32 4294901760, %v1335_v39  ;;  %1381 = vmatpush.msra.mxu2 %v4186_v16  ;;  %1310 = vmatpush.msra.mxu0 %v4170_v23  ;;  %v1342_v51 = vand.u32 4294901760, %v1341_v53  ;;  %v1348_v11 = vand.u32 4294901760, %v1347_v47  ;;  %v1533_v34 = vsub.f32 %v4209_v37, %v1532_v0  ;;  %v1688_v47 = vld [vmem:[#allocation3 + $0x28] sm:$0xff]  ;;  %s3500_s28 = scalar_lea.hbm %s3499_s26, 8  ;;  %p3505_p1 = scmp.lt.s32.totalorder %s3499_s26, %s4978_s15 }
 0x182   : > { %v1314_v57 = vsub.f32 %v4202_v6, %v4216_v46  ;;  %1410 = vmatpush.msra.mxu3 %v4170_v23  ;;  %v1528_v58 = vand.u32 4294901760, %v1527_v42  ;;  %v1539_v43 = vsub.f32 %v4212_v38, %v1538_v31  ;;  %v1501_v54 = vand.u32 4294901760, %v1476_v44  ;;  %p3501_p12 = scmp.ne.s32.totalorder %s3499_s26, %s3500_s28  ;;  %p3506_p3 = scmp.lt.s32.totalorder %s3504_s20, %s3500_s28 }
 0x183   : > { %1433 = vmatpush.msrb.mxu0 %v1334_v55  ;;  %1337 = vmatpush.msra.mxu1 %v1336_v19  ;;  %v1481_v50 = vsel %vm1287_vm1, %v1262_v48, 0  ;;  %v1534_v17 = vand.u32 4294901760, %v1533_v34  ;;  %v1354_v7 = vand.u32 4294901760, %v1353_v62  ;;  %v1686_v48 = vld [vmem:[#allocation3 + $0x18] sm:$0xff]  ;;  %vm1863_vm5 = vcmask 1043459  }
 0x184   : > { %1384 = vmatpush.msra.mxu2 %v4191_v60  ;;  %v4236_v10 = vand.u32 4294901760, %v1314_v57  ;;  %1414 = vmatmul.f32.vlgmr.msra.gmra.mxu3 %v4216_v46  ;;  %v1503_v56 = vand.u32 4294901760, %v1481_v50  ;;  %v1543_v14 = vsub.f32 %v1476_v44, %v1501_v54  ;;  %v1540_v15 = vand.u32 4294901760, %v1539_v43  ;;  %v4280_v57 = vld [vmem:[%s4968_s5] ss:$0 sm:$0xff]  ;;  %p3502_p13 = pnand %p3501_p12, %p3682_p5  ;;  %p3507_p4 = por %p3506_p3, %p3505_p1 }
 0x185   : > { %1387 = vmatmul.f32.vlgmr.msra.gmra.mxu2 %v4202_v6  ;;  %1343 = vmatpush.msra.mxu1 %v1342_v51  ;;  %vm1865_vm6 = vcmask 1044484   ;;  %vm1867_vm7 = vcmask 1045509   ;;  %vm1869_vm8 = vcmask 1046534   ;;  %vm1871_vm9 = vcmask 1047559  }
 0x186   : > { %1316 = vmatmul.f32.vlgmr.msra.gmra.mxu0 %v4236_v10  ;;  %1496 = vmatpush.msrb.mxu2 %v4173_v2  ;;  %v1504_v24 = vsub.f32 %v1481_v50, %v1503_v56  ;;  %v1544_v59 = vand.u32 4294901760, %v1543_v14  ;;  %v1691_v50 = vld [vmem:[#allocation3 + $0x40] sm:$0xff]  ;;  %vm1874_vm10 = vcmask 130048   ;;  %p3503_p0 = pneg %p3502_p13 }
 0x187   : > { %1529 = vmatpush.msrb.mxu3 %v1528_v58  ;;  %1349 = vmatpush.msra.mxu1 %v1348_v11  ;;  %v1689_v58 = vld [vmem:[#allocation3 + $0x30] sm:$0xff] }
 0x188   : > { %1437 = vmatpush.msrb.mxu0 %v1340_v41  ;;  %1498 = vmatpush.msrb.mxu2 %v4196_v33  ;;  %v1505_v32 = vand.u32 4294901760, %v1504_v24  ;;  %v1545_v13 = vsub.f32 %v1543_v14, %v1544_v59  ;;  %p3508_p7 = pnand %p3507_p4, %p3503_p0 }
 0x189   : > { %1535 = vmatpush.msrb.mxu3 %v1534_v17  ;;  %1355 = vmatpush.msra.mxu1 %v1354_v7  ;;  %v1690_v7 = vld [vmem:[#allocation3 + $0x38] sm:$0xff] }
 0x18a   : > { %1441 = vmatpush.msrb.mxu0 %v1346_v18  ;;  %1357 = vmatmul.f32.vlgmr.msra.gmra.mxu1 %v4188_v36  ;;  %v1506_v20 = vsub.f32 %v1504_v24, %v1505_v32  ;;  %v1546_v29 = vand.u32 4294901760, %v1545_v13 }
 0x18b   : > { %1500 = vmatpush.msrb.mxu2 %v4198_v9  ;;  %1464 = vmatpush.msrb.mxu1 %v4157_v35 }
 0x18c   : > { %1541 = vmatpush.msrb.mxu3 %v1540_v15  ;;  %1445 = vmatpush.msrb.mxu0 %v1352_v26  ;;  %v1507_v8 = vand.u32 4294901760, %v1506_v20  ;;  %v1685_v26 = vld [vmem:[#allocation3 + $0x10] sm:$0xff] }
 0x18d   : > { %1502 = vmatpush.msrb.mxu2 %v1501_v54  ;;  %1466 = vmatpush.msrb.mxu1 %v4159_v28 }
 0x18e   : > { %1547 = vmatpush.msrb.mxu3 %v1546_v29  ;;  %1447 = vmatmul.f32.vlgmr.msrb.gmra.mxu0 %v4188_v36 }
 0x18f   : > { %1508 = vmatmul.f32.vlgmr.msrb.gmra.mxu2 %v1507_v8  ;;  %1468 = vmatpush.msrb.mxu1 %v4161_v45 }
 0x190   : > { %1549 = vmatmul.f32.vlgmr.msrb.gmra.mxu3 %v1503_v56  ;;  %1625 = vmatpush.msra.mxu2 %v1526_v30  ;;  %v1687_v30 = vld [vmem:[#allocation3 + $0x20] sm:$0xff] }
 0x191   : > { %1567 = vmatpush.msra.mxu0 %v4194_v5  ;;  %1470 = vmatpush.msrb.mxu1 %v4170_v23 }
 0x192   : > { %1656 = vmatpush.msra.mxu3 %v4173_v2  ;;  %1629 = vmatpush.msra.mxu2 %v1532_v0 }
 0x193   : > { %1570 = vmatpush.msra.mxu0 %v4209_v37  ;;  %1472 = vmatmul.f32.vlgmr.msrb.gmra.mxu1 %v4188_v36  ;;  %v1684_v37 = vld [vmem:[#allocation3 + $0x8] sm:$0xff] }
 0x194   : > { %1658 = vmatpush.msra.mxu3 %v4196_v33  ;;  %1596 = vmatpush.msra.mxu1 %v4173_v2 }
 0x195   : > { %1633 = vmatpush.msra.mxu2 %v1538_v31  ;;  %1573 = vmatpush.msra.mxu0 %v4212_v38 }
 0x196   : > { %1660 = vmatpush.msra.mxu3 %v4198_v9  ;;  %1598 = vmatpush.msra.mxu1 %v4196_v33 }
 0x197   : > { %1637 = vmatpush.msra.mxu2 %v1544_v59  ;;  %1576 = vmatpush.msra.mxu0 %v1543_v14 }
 0x198   : > { %1639 = vmatmul.f32.vlgmr.msra.gmra.mxu2 %v1503_v56  ;;  %1579 = vmatmul.f32.vlgmr.msra.gmra.mxu0 %v1504_v24 }
 0x199   : > { %1600 = vmatpush.msra.mxu1 %v4198_v9  ;;  %1662 = vmatpush.msra.mxu3 %v1501_v54  ;;  %v1683_v9 = vld [vmem:[#allocation3] sm:$0xff] }
 0x19a   : > { %1664 = vmatmul.f32.vlgmr.msra.gmra.mxu3 %v1503_v56 }
 0x19b   : > { %1602 = vmatpush.msra.mxu1 %v1501_v54 }
 0x19c   : > { %1606 = vmatmul.f32.vlgmr.msra.gmra.mxu1 %v1505_v32 }
 0x203   : > { %v1317_v27 = vpop.f32.mrf.mxu0 }
 0x207   : > { %v1358_v40 = vpop.f32.mrf.mxu1  ;;  %v1415_v49 = vpop.f32.mrf.mxu3 }
 0x208   : > { %v1388_v52 = vpop.f32.mrf.mxu2  ;;  %v1359_v25 = vadd.f32 %v1358_v40, %v1317_v27 }
 0x20a   : > { %v1389_v35 = vadd.f32 %v1388_v52, %v1359_v25 }
 0x20b   : > { %v1448_v28 = vpop.f32.mrf.mxu0 }
 0x20c   : > { %v1416_v45 = vadd.f32 %v1415_v49, %v1389_v35  ;;  %v1692_v49 = vld [vmem:[#allocation3 + $0x48] sm:$0xff] }
 0x20e   : > { %v1449_v61 = vadd.f32 %v1448_v28, %v1416_v45  ;;  %v1694_v45 = vld [vmem:[#allocation3 + $0x58] sm:$0xff] }
 0x210   : > { %v1473_v1 = vpop.f32.mrf.mxu1 }
 0x211   : > { %v4268_v22 = vadd.f32 %v1473_v1, %v1449_v61 }
 0x212   : > { %v1509_v23 = vpop.f32.mrf.mxu2 }
 0x213   : > { %v1550_v63 = vpop.f32.mrf.mxu3 }
 0x214   : > { %v1551_v2 = vadd.f32 %v1550_v63, %v1509_v23  ;;  %v1693_v23 = vld [vmem:[#allocation3 + $0x50] sm:$0xff] }
 0x215   : > { %v1580_v21 = vpop.f32.mrf.mxu0 }
 0x216   : > { %v1581_v3 = vadd.f32 %v1580_v21, %v1551_v2 }
 0x219   : > { %v1607_v4 = vpop.f32.mrf.mxu1 }
 0x21a   : > { %v1608_v12 = vadd.f32 %v1607_v4, %v1581_v3 }
 0x21b   : > { %v1640_v16 = vpop.f32.mrf.mxu2 }
 0x21c   : > { %v1641_v60 = vadd.f32 %v1640_v16, %v1608_v12 }
 0x21d   : > { %v1665_v5 = vpop.f32.mrf.mxu3 }
 0x21e   : > { %v4270_v33 = vadd.f32 %v1665_v5, %v1641_v60 }
 0x220   : > { %v1699_v55 = vperm.slane %v4270_v33, 0  ;;  %v1677_v41 = vrot.slane %v4270_v33, 2  ;;  %v1676_v18 = vrot.slane %v4270_v33, 1  ;;  %v1678_v42 = vrot.slane %v4270_v33, 3 }
 0x221   : > { %v1679_v51 = vrot.slane %v4270_v33, 4  ;;  %v1680_v20 = vrot.slane %v4270_v33, 5  ;;  %v1681_v63 = vrot.slane %v4270_v33, 6  ;;  %v1682_v4 = vrot.slane %v4270_v33, 7 }
 0x222   : > { %v1715_v38 = vadd.f32 %v1699_v55, %v1683_v9  ;;  %v1701_v39 = vperm.slane %v1677_v41, 0  ;;  %v1700_v53 = vperm.slane %v1676_v18, 0  ;;  %v1716_v44 = vadd.f32 %v1699_v55, %v1684_v37  ;;  %v1695_v18 = vld [vmem:[#allocation3 + $0x60] sm:$0xff]  ;;  %v1697_v37 = vld [vmem:[#allocation3 + $0x70] sm:$0xff] }
 0x223   : > { %v1702_v11 = vperm.slane %v1678_v42, 0  ;;  %v1703_v43 = vperm.slane %v1679_v51, 0  ;;  %v1704_v35 = vperm.slane %v1680_v20, 0  ;;  %v1705_v9 = vperm.slane %v1681_v63, 0 }
 0x224   : > { %3369 = vtanh.f32 %v1715_v38  ;;  %v1719_v0 = vadd.f32 %v1701_v39, %v1687_v30  ;;  %v1717_v31 = vadd.f32 %v1700_v53, %v1685_v26  ;;  %v1720_v19 = vadd.f32 %v1701_v39, %v1688_v47 }
 0x225   : > { %v1718_v62 = vadd.f32 %v1700_v53, %v1686_v48  ;;  %v1721_v56 = vadd.f32 %v1702_v11, %v1689_v58  ;;  %v1723_v13 = vadd.f32 %v1703_v43, %v1691_v50  ;;  %v1722_v8 = vadd.f32 %v1702_v11, %v1690_v7  ;;  %v1696_v53 = vld [vmem:[#allocation3 + $0x68] sm:$0xff]  ;;  %v1698_v11 = vld [vmem:[#allocation3 + $0x78] sm:$0xff] }
 0x226   : > { %3371 = vtanh.f32 %v1719_v0  ;;  %v1724_v1 = vadd.f32 %v1703_v43, %v1692_v49  ;;  %v1726_v3 = vadd.f32 %v1704_v35, %v1694_v45  ;;  %v1725_v16 = vadd.f32 %v1704_v35, %v1693_v23 }
 0x227   : > { %3373 = vtanh.f32 %v1717_v31  ;;  %v1706_v30 = vperm.slane %v1682_v4, 0  ;;  %v1727_v39 = vadd.f32 %v1705_v9, %v1695_v18 }
 0x228   : > { %3375 = vtanh.f32 %v1716_v44  ;;  %v1728_v44 = vadd.f32 %v1705_v9, %v1696_v53 }
 0x229   : > { %3377 = vtanh.f32 %v1720_v19  ;;  %v1729_v0 = vadd.f32 %v1706_v30, %v1697_v37  ;;  %v1730_v43 = vadd.f32 %v1706_v30, %v1698_v11 }
 0x22a   : > { %v3370_v34 = vpop.eup %3369  ;;  %3379 = vtanh.f32 %v1718_v62 }
 0x22b   : > { %v1751_v54 = vmul.f32 %v3370_v34, %v4280_v57  ;;  %3381 = vtanh.f32 %v1721_v56 }
 0x22c   : > { %v3372_v17 = vpop.eup %3371  ;;  %3383 = vtanh.f32 %v1723_v13 }
 0x22d   : > { %v3374_v14 = vpop.eup %3373  ;;  %v1767_v24 = vsel %vm1287_vm1, %v1751_v54, 0.0  ;;  %v1755_v15 = vmul.f32 %v3372_v17, %v4280_v57  ;;  %3385 = vtanh.f32 %v1722_v8 }
 0x22e   : > { %v3376_v59 = vpop.eup %3375  ;;  %1768 = vadd.xlane.f32.xlu0 %v1767_v24  ;;  %v1753_v32 = vmul.f32 %v3374_v14, %v4280_v57  ;;  %3387 = vtanh.f32 %v1724_v1 }
 0x22f   : > { %v1779_v29 = vsel %vm1287_vm1, %v1755_v15, 0.0  ;;  %v3378_v27 = vpop.eup %3377  ;;  %v1752_v25 = vmul.f32 %v3376_v59, %v4280_v57  ;;  %3389 = vtanh.f32 %v1726_v3 }
 0x230   : > { %1780 = vadd.xlane.f32.xlu2 %v1779_v29  ;;  %v1773_v40 = vsel %vm1287_vm1, %v1753_v32, 0.0  ;;  %v3380_v52 = vpop.eup %3379  ;;  %v1756_v28 = vmul.f32 %v3378_v27, %v4280_v57  ;;  %3391 = vtanh.f32 %v1725_v16 }
 0x231   : > { %1774 = vadd.xlane.f32.xlu1 %v1773_v40  ;;  %v1754_v61 = vmul.f32 %v3380_v52, %v4280_v57  ;;  %v1770_v2 = vsel %vm1287_vm1, %v1752_v25, 0.0  ;;  %v3382_v21 = vpop.eup %3381  ;;  %3393 = vtanh.f32 %v1727_v39 }
 0x232   : > { %v1782_v12 = vsel %vm1287_vm1, %v1756_v28, 0.0  ;;  %v3384_v60 = vpop.eup %3383  ;;  %v1757_v41 = vmul.f32 %v3382_v21, %v4280_v57  ;;  %3395 = vtanh.f32 %v1729_v0 }
 0x233   : > { %v1776_v5 = vsel %vm1287_vm1, %v1754_v61, 0.0  ;;  %v3386_v55 = vpop.eup %3385  ;;  %v1759_v26 = vmul.f32 %v3384_v60, %v4280_v57  ;;  %3397 = vtanh.f32 %v1728_v44 }
 0x234   : > { %v1758_v38 = vmul.f32 %v3386_v55, %v4280_v57  ;;  %v1785_v47 = vsel %vm1287_vm1, %v1757_v41, 0.0  ;;  %v3388_v42 = vpop.eup %3387  ;;  %3399 = vtanh.f32 %v1730_v43 }
 0x235   : > { %v1791_v31 = vsel %vm1287_vm1, %v1759_v26, 0.0  ;;  %v3390_v48 = vpop.eup %3389  ;;  %v1760_v62 = vmul.f32 %v3388_v42, %v4280_v57 }
 0x236   : > { %1771 = vadd.xlane.f32.xlu0 %v1770_v2  ;;  %v1788_v19 = vsel %vm1287_vm1, %v1758_v38, 0.0  ;;  %v3392_v51 = vpop.eup %3391  ;;  %v1762_v58 = vmul.f32 %v3390_v48, %v4280_v57 }
 0x237   : > { %v1761_v34 = vmul.f32 %v3392_v51, %v4280_v57  ;;  %v1794_v54 = vsel %vm1287_vm1, %v1760_v62, 0.0  ;;  %v3394_v50 = vpop.eup %3393 }
 0x238   : > { %1783 = vadd.xlane.f32.xlu2 %v1782_v12  ;;  %v1800_v17 = vsel %vm1287_vm1, %v1762_v58, 0.0  ;;  %v3396_v56 = vpop.eup %3395  ;;  %v1763_v24 = vmul.f32 %v3394_v50, %v4280_v57 }
 0x239   : > { %1777 = vadd.xlane.f32.xlu1 %v1776_v5  ;;  %v1797_v7 = vsel %vm1287_vm1, %v1761_v34, 0.0  ;;  %v3398_v14 = vpop.eup %3397  ;;  %v1765_v15 = vmul.f32 %v3396_v56, %v4280_v57 }
 0x23a   : > { %v1764_v59 = vmul.f32 %v3398_v14, %v4280_v57  ;;  %v1803_v32 = vsel %vm1287_vm1, %v1763_v24, 0.0  ;;  %v3400_v13 = vpop.eup %3399 }
 0x23b   : > { %v1809_v20 = vsel %vm1287_vm1, %v1765_v15, 0.0  ;;  %v1766_v8 = vmul.f32 %v3400_v13, %v4280_v57  ;;  %v1831_v57 = vlaneseq }
 0x23c   : > { %v1806_v29 = vsel %vm1287_vm1, %v1764_v59, 0.0  ;;  %v3552_v59 = vmov 0  }
 0x23d   : > { %v1812_v27 = vsel %vm1287_vm1, %v1766_v8, 0.0  ;;  %v4335_v23 = vand.u32 127, %v1831_v57  ;;  %3364 = vset.pattern.permute.xlu1 %v3552_v59  ;;  %3363 = vset.pattern.permute.xlu0 %v3552_v59 }
 0x23e   : > { %1786 = vadd.xlane.f32.xlu0 %v1785_v47  ;;  %3362 = vset.pattern.permute.xlu2 %v3552_v59 }
 0x23f   : > { %v4340_v2 = vadd.s32 4294967288, %v4335_v23 }
 0x240   : > { %1792 = vadd.xlane.f32.xlu2 %v1791_v31 }
 0x241   : > { %1789 = vadd.xlane.f32.xlu1 %v1788_v19 }
 0x246   : > { %1795 = vadd.xlane.f32.xlu0 %v1794_v54 }
 0x248   : > { %1801 = vadd.xlane.f32.xlu2 %v1800_v17 }
 0x249   : > { %1798 = vadd.xlane.f32.xlu1 %v1797_v7 }
 0x24e   : > { %1804 = vadd.xlane.f32.xlu0 %v1803_v32 }
 0x250   : > { %1810 = vadd.xlane.f32.xlu2 %v1809_v20 }
 0x251   : > { %1807 = vadd.xlane.f32.xlu1 %v1806_v29 }
 0x256   : > { %1813 = vadd.xlane.f32.xlu0 %v1812_v27 }
 0x2a1   : > { %v4317_v40 = vpop.xlane.xlu0 %1768 }
 0x2a2   : > { %v1833_v5 = vperm.slane %v4317_v40, %v4335_v23 }
 0x2a3   : > { %v4319_v52 = vpop.xlane.xlu2 %1780 }
 0x2a4   : > { %v4321_v25 = vpop.xlane.xlu1 %1774  ;;  %v1841_v41 = vperm.slane %v4319_v52, %v4335_v23 }
 0x2a5   : > { %v1838_v12 = vperm.slane %v4321_v25, %v4335_v23 }
 0x2a9   : > { %v4323_v49 = vpop.xlane.xlu0 %1771 }
 0x2aa   : > { %v1835_v16 = vperm.slane %v4323_v49, %v4340_v2 }
 0x2ab   : > { %v4325_v35 = vpop.xlane.xlu2 %1783 }
 0x2ac   : > { %v4327_v28 = vpop.xlane.xlu1 %1777  ;;  %v1842_v60 = vperm.slane %v4325_v35, %v4340_v2  ;;  %v1837_v26 = vsel %vm1836_vm2, %v1835_v16, %v1833_v5 }
 0x2ad   : > { %v1839_v21 = vperm.slane %v4327_v28, %v4340_v2 }
 0x2ae   : > { %v1843_v38 = vsel %vm1836_vm2, %v1842_v60, %v1841_v41 }
 0x2af   : > { %v1840_v9 = vsel %vm1836_vm2, %v1839_v21, %v1838_v12 }
 0x2b0   : > { %v1860_v39 = vsel %vm1859_vm3, %v1840_v9, %v1837_v26 }
 0x2b1   : > { %v4329_v45 = vpop.xlane.xlu0 %1786  ;;  %v1862_v19 = vsel %vm1861_vm4, %v1843_v38, %v1860_v39 }
 0x2b2   : > { %v1844_v37 = vperm.slane %v4329_v45, %v4335_v23 }
 0x2b3   : > { %v4331_v61 = vpop.xlane.xlu2 %1792 }
 0x2b4   : > { %v4333_v1 = vpop.xlane.xlu1 %1789  ;;  %v1847_v53 = vperm.slane %v4331_v61, %v4335_v23 }
 0x2b5   : > { %v1845_v55 = vperm.slane %v4333_v1, %v4340_v2 }
 0x2b7   : > { %v1846_v47 = vsel %vm1836_vm2, %v1845_v55, %v1844_v37 }
 0x2b8   : > { %v1864_v51 = vsel %vm1863_vm5, %v1846_v47, %v1862_v19 }
 0x2b9   : > { %v4337_v63 = vpop.xlane.xlu0 %1795 }
 0x2ba   : > { %v1848_v18 = vperm.slane %v4337_v63, %v4340_v2 }
 0x2bb   : > { %v4346_v4 = vpop.xlane.xlu2 %1801 }
 0x2bc   : > { %v4344_v3 = vpop.xlane.xlu1 %1798  ;;  %v1851_v42 = vperm.slane %v4346_v4, %v4340_v2  ;;  %v1849_v44 = vsel %vm1836_vm2, %v1848_v18, %v1847_v53 }
 0x2bd   : > { %v1850_v0 = vperm.slane %v4344_v3, %v4335_v23  ;;  %v1866_v34 = vsel %vm1865_vm6, %v1849_v44, %v1864_v51 }
 0x2bf   : > { %v1852_v58 = vsel %vm1836_vm2, %v1851_v42, %v1850_v0 }
 0x2c0   : > { %v1868_v56 = vsel %vm1867_vm7, %v1852_v58, %v1866_v34 }
 0x2c1   : > { %v4363_v30 = vpop.xlane.xlu0 %1804 }
 0x2c2   : > { %v1853_v62 = vperm.slane %v4363_v30, %v4335_v23 }
 0x2c3   : > { %v4386_v11 = vpop.xlane.xlu2 %1810 }
 0x2c4   : > { %v4377_v31 = vpop.xlane.xlu1 %1807  ;;  %v1856_v50 = vperm.slane %v4386_v11, %v4335_v23 }
 0x2c5   : > { %v1854_v48 = vperm.slane %v4377_v31, %v4340_v2 }
 0x2c7   : > { %v1855_v54 = vsel %vm1836_vm2, %v1854_v48, %v1853_v62 }
 0x2c8   : > { %v1870_v14 = vsel %vm1869_vm8, %v1855_v54, %v1868_v56 }
 0x2c9   : > { %v4390_v43 = vpop.xlane.xlu0 %1813 }
 0x2ca   : > { %v1857_v17 = vperm.slane %v4390_v43, %v4340_v2 }
 0x2cc   : > { %v1858_v7 = vsel %vm1836_vm2, %v1857_v17, %v1856_v50 }
 0x2cd   : > { %v1872_v24 = vsel %vm1871_vm9, %v1858_v7, %v1870_v14 }
 0x2ce   : > { %v1875_v15 = vsel %vm1874_vm10, %v1872_v24, -inf }
 0x2cf   : > { %1876 = vmax.xlane.f32.xlu1 %v1875_v15 }
 0x342   : > { %v4402_v32 = vpop.xlane.xlu1 %1876 }
 0x343   : > { %v1880_v13 = vperm.slane %v4402_v32, 1  ;;  %v1879_v20 = vperm.slane %v4402_v32, 0  ;;  %v1881_v57 = vperm.slane %v4402_v32, 2  ;;  %v1883_v21 = vperm.slane %v4402_v32, 4 }
 0x344   : > { %v1884_v41 = vperm.slane %v4402_v32, 5  ;;  %v1886_v47 = vperm.slane %v4402_v32, 7  ;;  %v1885_v51 = vperm.slane %v4402_v32, 6 }
 0x345   : > { %v1897_v29 = vsub.f32 %v4321_v25, %v1880_v13  ;;  %v1896_v8 = vsub.f32 %v4323_v49, %v1879_v20  ;;  %v1895_v27 = vsub.f32 %v4317_v40, %v1879_v20  ;;  %v1900_v5 = vsub.f32 %v4325_v35, %v1881_v57 }
 0x346   : > { %v1903_v9 = vsub.f32 %v4331_v61, %v1883_v21  ;;  %v1898_v25 = vsub.f32 %v4327_v28, %v1880_v13  ;;  %v1882_v49 = vperm.slane %v4402_v32, 3  ;;  %v1906_v61 = vsub.f32 %v4346_v4, %v1884_v41 }
 0x347   : > { %v1915_v12 = vmul.f32 1.442695, %v1897_v29  ;;  %v1913_v16 = vmul.f32 1.442695, %v1896_v8  ;;  %v1911_v60 = vmul.f32 1.442695, %v1895_v27  ;;  %v1899_v38 = vsub.f32 %v4319_v52, %v1881_v57 }
 0x348   : > { %v1921_v55 = vmul.f32 1.442695, %v1900_v5  ;;  %v1927_v40 = vmul.f32 1.442695, %v1903_v9  ;;  %v1917_v26 = vmul.f32 1.442695, %v1898_v25  ;;  %v1902_v28 = vsub.f32 %v4333_v1, %v1882_v49 }
 0x349   : > { %3401 = vpow2.f32 %v1915_v12  ;;  %v1933_v53 = vmul.f32 1.442695, %v1906_v61  ;;  %v1919_v0 = vmul.f32 1.442695, %v1899_v38  ;;  %v1905_v4 = vsub.f32 %v4344_v3, %v1884_v41 }
 0x34a   : > { %3403 = vpow2.f32 %v1913_v16  ;;  %v1925_v39 = vmul.f32 1.442695, %v1902_v28  ;;  %v1909_v52 = vsub.f32 %v4386_v11, %v1886_v47  ;;  %v1901_v48 = vsub.f32 %v4329_v45, %v1882_v49 }
 0x34b   : > { %3405 = vpow2.f32 %v1911_v60  ;;  %v1931_v19 = vmul.f32 1.442695, %v1905_v4  ;;  %v1908_v11 = vsub.f32 %v4377_v31, %v1885_v51  ;;  %v1904_v45 = vsub.f32 %v4337_v63, %v1883_v21 }
 0x34c   : > { %3407 = vpow2.f32 %v1921_v55  ;;  %v1939_v62 = vmul.f32 1.442695, %v1909_v52  ;;  %v1923_v34 = vmul.f32 1.442695, %v1901_v48  ;;  %v1907_v31 = vsub.f32 %v4363_v30, %v1885_v51 }
 0x34d   : > { %3409 = vpow2.f32 %v1927_v40  ;;  %v1937_v50 = vmul.f32 1.442695, %v1908_v11  ;;  %v1929_v56 = vmul.f32 1.442695, %v1904_v45  ;;  %v1910_v59 = vsub.f32 %v4390_v43, %v1886_v47 }
 0x34e   : > { %3411 = vpow2.f32 %v1917_v26  ;;  %v1935_v63 = vmul.f32 1.442695, %v1907_v31 }
 0x34f   : > { %v4416_v18 = vpop.eup %3401  ;;  %3413 = vpow2.f32 %v1925_v39  ;;  %v1941_v32 = vmul.f32 1.442695, %v1910_v59 }
 0x350   : > { %v4418_v37 = vpop.eup %3403  ;;  %1966 = vperm.xlu1 %3364, %v4416_v18   ;;  %3415 = vpow2.f32 %v1933_v53 }
 0x351   : > { %v4421_v35 = vpop.eup %3405  ;;  %1963 = vperm.xlu0 %3363, %v4418_v37   ;;  %3417 = vpow2.f32 %v1919_v0 }
 0x352   : > { %1960 = vperm.xlu2 %3362, %v4421_v35   ;;  %v4429_v42 = vpop.eup %3407  ;;  %3419 = vpow2.f32 %v1931_v19 }
 0x353   : > { %v4431_v44 = vpop.eup %3409  ;;  %3421 = vpow2.f32 %v1939_v62 }
 0x354   : > { %v4434_v1 = vpop.eup %3411  ;;  %3423 = vpow2.f32 %v1923_v34 }
 0x355   : > { %v4442_v58 = vpop.eup %3413  ;;  %3425 = vpow2.f32 %v1937_v50 }
 0x356   : > { %v4444_v54 = vpop.eup %3415  ;;  %3427 = vpow2.f32 %v1929_v56 }
 0x357   : > { %v4447_v3 = vpop.eup %3417  ;;  %3429 = vpow2.f32 %v1935_v63 }
 0x358   : > { %1975 = vperm.xlu1 %3364, %v4429_v42   ;;  %v4453_v17 = vpop.eup %3419  ;;  %3431 = vpow2.f32 %v1941_v32 }
 0x359   : > { %1984 = vperm.xlu0 %3363, %v4431_v44   ;;  %v4455_v7 = vpop.eup %3421 }
 0x35a   : > { %1969 = vperm.xlu2 %3362, %v4434_v1   ;;  %v4458_v14 = vpop.eup %3423 }
 0x35b   : > { %v4463_v24 = vpop.eup %3425 }
 0x35c   : > { %v4466_v15 = vpop.eup %3427 }
 0x35d   : > { %v4470_v13 = vpop.eup %3429 }
 0x35e   : > { %v4473_v20 = vpop.eup %3431 }
 0x360   : > { %1981 = vperm.xlu1 %3364, %v4442_v58  }
 0x361   : > { %1993 = vperm.xlu0 %3363, %v4444_v54  }
 0x362   : > { %1972 = vperm.xlu2 %3362, %v4447_v3  }
 0x368   : > { %1990 = vperm.xlu1 %3364, %v4453_v17  }
 0x369   : > { %2002 = vperm.xlu0 %3363, %v4455_v7  }
 0x36a   : > { %1978 = vperm.xlu2 %3362, %v4458_v14  }
 0x370   : > { %1999 = vperm.xlu1 %3364, %v4463_v24  }
 0x372   : > { %1987 = vperm.xlu2 %3362, %v4466_v15  }
 0x37a   : > { %1996 = vperm.xlu2 %3362, %v4470_v13  }
 0x382   : > { %2005 = vperm.xlu2 %3362, %v4473_v20  }
 0x3ac   : > { %v1961_v30 = vpop.permute.xlu2 %1960 }
 0x3ad   : > { %v2007_v40 = vperm.slane %v1961_v30, %v4335_v23 }
 0x3b4   : > { %v1970_v29 = vpop.permute.xlu2 %1969 }
 0x3b5   : > { %v2011_v41 = vperm.slane %v1970_v29, %v4340_v2 }
 0x3bc   : > { %v1973_v8 = vpop.permute.xlu2 %1972 }
 0x3bd   : > { %v2013_v61 = vperm.slane %v1973_v8, %v4335_v23 }
 0x3c2   : > { %v1967_v27 = vpop.permute.xlu1 %1966 }
 0x3c3   : > { %v1964_v57 = vpop.permute.xlu0 %1963  ;;  %v2010_v25 = vperm.slane %v1967_v27, %v4335_v23 }
 0x3c4   : > { %v1979_v21 = vpop.permute.xlu2 %1978  ;;  %v2008_v55 = vperm.slane %v1964_v57, %v4340_v2 }
 0x3c5   : > { %v2012_v38 = vsel %vm1836_vm2, %v2011_v41, %v2010_v25  ;;  %v2016_v53 = vperm.slane %v1979_v21, %v4335_v23 }
 0x3c6   : > { %v2009_v39 = vsel %vm1836_vm2, %v2008_v55, %v2007_v40 }
 0x3c7   : > { %v2031_v52 = vsel %vm1859_vm3, %v2012_v38, %v2009_v39 }
 0x3ca   : > { %v1976_v12 = vpop.permute.xlu1 %1975 }
 0x3cb   : > { %v1985_v16 = vpop.permute.xlu0 %1984  ;;  %v2014_v49 = vperm.slane %v1976_v12, %v4340_v2 }
 0x3cc   : > { %v1988_v60 = vpop.permute.xlu2 %1987  ;;  %v2019_v48 = vperm.slane %v1985_v16, %v4335_v23 }
 0x3cd   : > { %v2015_v47 = vsel %vm1836_vm2, %v2014_v49, %v2013_v61  ;;  %v2020_v19 = vperm.slane %v1988_v60, %v4340_v2 }
 0x3ce   : > { %v2032_v34 = vsel %vm1861_vm4, %v2015_v47, %v2031_v52 }
 0x3cf   : > { %v2021_v59 = vsel %vm1836_vm2, %v2020_v19, %v2019_v48 }
 0x3d2   : > { %v1982_v43 = vpop.permute.xlu1 %1981 }
 0x3d3   : > { %v1994_v5 = vpop.permute.xlu0 %1993  ;;  %v2017_v26 = vperm.slane %v1982_v43, %v4340_v2 }
 0x3d4   : > { %v1997_v9 = vpop.permute.xlu2 %1996  ;;  %v2023_v11 = vperm.slane %v1994_v5, %v4340_v2 }
 0x3d5   : > { %v2018_v0 = vsel %vm1836_vm2, %v2017_v26, %v2016_v53  ;;  %v2025_v32 = vperm.slane %v1997_v9, %v4335_v23 }
 0x3d6   : > { %v2033_v45 = vsel %vm1863_vm5, %v2018_v0, %v2032_v34 }
 0x3d7   : > { %v2034_v29 = vsel %vm1865_vm6, %v2021_v59, %v2033_v45 }
 0x3da   : > { %v1991_v28 = vpop.permute.xlu1 %1990 }
 0x3db   : > { %v2022_v4 = vperm.slane %v1991_v28, %v4335_v23  ;;  %v2003_v51 = vpop.permute.xlu0 %2002 }
 0x3dc   : > { %v2006_v62 = vpop.permute.xlu2 %2005  ;;  %v2028_v56 = vperm.slane %v2003_v51, %v4335_v23 }
 0x3dd   : > { %v2024_v50 = vsel %vm1836_vm2, %v2023_v11, %v2022_v4  ;;  %v2029_v31 = vperm.slane %v2006_v62, %v4340_v2 }
 0x3de   : > { %v2035_v27 = vsel %vm1867_vm7, %v2024_v50, %v2034_v29 }
 0x3df   : > { %v2030_v57 = vsel %vm1836_vm2, %v2029_v31, %v2028_v56 }
 0x3e2   : > { %v2000_v63 = vpop.permute.xlu1 %1999 }
 0x3e3   : > { %v2026_v30 = vperm.slane %v2000_v63, %v4340_v2 }
 0x3e5   : > { %v2027_v8 = vsel %vm1836_vm2, %v2026_v30, %v2025_v32 }
 0x3e6   : > { %v2036_v21 = vsel %vm1869_vm8, %v2027_v8, %v2035_v27 }
 0x3e7   : > { %v2037_v12 = vsel %vm1871_vm9, %v2030_v57, %v2036_v21 }
 0x3e8   : > { %v2039_v16 = vsel %vm1874_vm10, %v2037_v12, 0.0 }
 0x3e9   : > { %2040 = vadd.xlane.f32.xlu1 %v2039_v16 }
 0x45c   : > { %v4508_v60 = vpop.xlane.xlu1 %2040 }
 0x45d   : > { %v2043_v23 = vperm.slane %v4508_v60, 0  ;;  %v2044_v2 = vperm.slane %v4508_v60, 1  ;;  %v4513_v43 = vperm.slane %v4508_v60, 2  ;;  %v2048_v5 = vperm.slane %v4508_v60, 5 }
 0x45e   : > { %v4518_v25 = vperm.slane %v4508_v60, 3  ;;  %v4526_v52 = vperm.slane %v4508_v60, 4 }
 0x45f   : > { %3433 = vrcp.f32 %v2043_v23  ;;  %v2068_v28 = vand.u32 2147483647, %v2043_v23  ;;  %v2070_v61 = vand.u32 2147483648, %v2043_v23  ;;  %v2148_v48 = vand.u32 2147483647, %v2048_v5 }
 0x460   : > { %3435 = vrcp.f32 %v2044_v2  ;;  %vm2064_vm12 = vweird.f32 %v2043_v23  ;;  %v2150_v62 = vand.u32 2147483648, %v2048_v5  ;;  %v2086_v59 = vand.u32 2147483648, %v2044_v2 }
 0x461   : > { %3437 = vrcp.f32 %v4513_v43  ;;  %vm2069_vm14 = vcmp.eq.f32.partialorder %v2068_v28, 8.507059e+37  ;;  %v2071_v34 = vor.u32 1.1754944e-38, %v2070_v61  ;;  %vm2080_vm2 = vweird.f32 %v2044_v2 }
 0x462   : > { %3439 = vrcp.f32 %v2048_v5  ;;  %v2084_v29 = vand.u32 2147483647, %v2044_v2  ;;  %vm2144_vm10 = vweird.f32 %v2048_v5  ;;  %v2151_v57 = vor.u32 1.1754944e-38, %v2150_v62 }
 0x463   : > { %3441 = vrcp.f32 %v4518_v25  ;;  %v2087_v16 = vor.u32 1.1754944e-38, %v2086_v59 }
 0x464   : > { %3443 = vrcp.f32 %v4526_v52 }
 0x465   : > { %v3434_v9 = vpop.eup %3433 }
 0x466   : > { %v3436_v55 = vpop.eup %3435  ;;  %v2060_v49 = vmul.f32 %v3434_v9, %v2043_v23  ;;  %vm2065_vm11 = vweird.f32 %v3434_v9 }
 0x467   : > { %v4520_v40 = vpop.eup %3437  ;;  %v2076_v41 = vmul.f32 %v3436_v55, %v2044_v2  ;;  %vm2066_vm13 = vmor %vm2064_vm12, %vm2065_vm11  ;;  %vm2081_vm15 = vweird.f32 %v3436_v55  ;;  %v4545_v2 = vperm.slane %v4508_v60, 6 }
 0x468   : > { %v2061_v26 = vsub.f32 1.0, %v2060_v49  ;;  %v3440_v39 = vpop.eup %3439  ;;  %v2092_v47 = vmul.f32 %v4520_v40, %v4513_v43  ;;  %vm4533_vm11 = vmor %vm2080_vm2, %vm2081_vm15  ;;  %vm2097_vm15 = vweird.f32 %v4520_v40 }
 0x469   : > { %v2077_v38 = vsub.f32 1.0, %v2076_v41  ;;  %v2140_v0 = vmul.f32 %v3440_v39, %v2048_v5  ;;  %v4528_v56 = vpop.eup %3441  ;;  %vm2145_vm0 = vweird.f32 %v3440_v39  ;;  %3445 = vrcp.f32 %v4545_v2 }
 0x46a   : > { %v2062_v53 = vmul.f32 %v3434_v9, %v2061_v26  ;;  %v2093_v50 = vsub.f32 1.0, %v2092_v47  ;;  %vm2146_vm12 = vmor %vm2144_vm10, %vm2145_vm0  ;;  %v3444_v41 = vpop.eup %3443  ;;  %v2102_v26 = vand.u32 2147483648, %v4513_v43  ;;  %vm2096_vm0 = vweird.f32 %v4513_v43 }
 0x46b   : > { %v2078_v4 = vmul.f32 %v3436_v55, %v2077_v38  ;;  %v2141_v51 = vsub.f32 1.0, %v2140_v0  ;;  %v2100_v38 = vand.u32 2147483647, %v4513_v43  ;;  %vm2098_vm2 = vmor %vm2096_vm0, %vm2097_vm15  ;;  %vm2129_vm15 = vweird.f32 %v3444_v41 }
 0x46c   : > { %v2063_v19 = vadd.f32 %v3434_v9, %v2062_v53  ;;  %v2124_v53 = vmul.f32 %v3444_v41, %v4526_v52  ;;  %v2103_v47 = vor.u32 1.1754944e-38, %v2102_v26  ;;  %vm2128_vm0 = vweird.f32 %v4526_v52 }
 0x46d   : > { %v2079_v45 = vadd.f32 %v3436_v55, %v2078_v4  ;;  %v2142_v31 = vmul.f32 %v3440_v39, %v2141_v51  ;;  %vm2101_vm10 = vcmp.eq.f32.partialorder %v2100_v38, 8.507059e+37  ;;  %v2116_v51 = vand.u32 2147483647, %v4518_v25 }
 0x46e   : > { %v2067_v11 = vsel %vm2066_vm13, %v3434_v9, %v2063_v19  ;;  %vm2149_vm13 = vcmp.eq.f32.partialorder %v2148_v48, 8.507059e+37  ;;  %v2125_v43 = vsub.f32 1.0, %v2124_v53  ;;  %v2118_v48 = vand.u32 2147483648, %v4518_v25 }
 0x46f   : > { %v2072_v63 = vsel %vm2069_vm14, %v2071_v34, %v2067_v11  ;;  %v2143_v8 = vadd.f32 %v3440_v39, %v2142_v31  ;;  %v2083_v21 = vsel %vm4533_vm11, %v3436_v55, %v2079_v45  ;;  %vm2085_vm14 = vcmp.eq.f32.partialorder %v2084_v29, 8.507059e+37  ;;  %v3446_v4 = vpop.eup %3445 }
 0x470   : > { %v2074_v32 = vmul.f32 %v4418_v37, %v2072_v63  ;;  %v2073_v30 = vmul.f32 %v4421_v35, %v2072_v63  ;;  %v2094_v37 = vmul.f32 %v4520_v40, %v2093_v50  ;;  %v2108_v35 = vmul.f32 %v4528_v56, %v4518_v25 }
 0x471   : > { %v2147_v12 = vsel %vm2146_vm12, %v3440_v39, %v2143_v8  ;;  %v2088_v9 = vsel %vm2085_vm14, %v2087_v16, %v2083_v21  ;;  %vm2113_vm11 = vweird.f32 %v4528_v56  ;;  %vm2112_vm12 = vweird.f32 %v4518_v25 }
 0x472   : > { %2194 = vperm.xlu2 %3362, %v2074_v32   ;;  %2189 = vperm.xlu0 %3363, %v2073_v30   ;;  %v4542_v23 = vsel %vm2149_vm13, %v2151_v57, %v2147_v12  ;;  %v2095_v55 = vadd.f32 %v4520_v40, %v2094_v37  ;;  %v2109_v49 = vsub.f32 1.0, %v2108_v35  ;;  %v2090_v28 = vmul.f32 %v4434_v1, %v2088_v9  ;;  %vm2114_vm13 = vmor %vm2112_vm12, %vm2113_vm11 }
 0x473   : > { %v2153_v5 = vmul.f32 %v4453_v17, %v4542_v23  ;;  %v2089_v61 = vmul.f32 %v4416_v18, %v2088_v9  ;;  %v4561_v1 = vperm.slane %v4508_v60, 7  ;;  %v2126_v62 = vmul.f32 %v3444_v41, %v2125_v43 }
 0x474   : > { %v2099_v17 = vsel %vm2098_vm2, %v4520_v40, %v2095_v55  ;;  %v2110_v39 = vmul.f32 %v4528_v56, %v2109_v49  ;;  %v2156_v34 = vmul.f32 %v3446_v4, %v4545_v2  ;;  %v2119_v11 = vor.u32 1.1754944e-38, %v2118_v48  ;;  %vm2130_vm2 = vmor %vm2128_vm0, %vm2129_vm15 }
 0x475   : > { %2239 = vperm.xlu1 %3364, %v2153_v5   ;;  %v2104_v18 = vsel %vm2101_vm10, %v2103_v47, %v2099_v17  ;;  %3447 = vrcp.f32 %v4561_v1  ;;  %vm2117_vm14 = vcmp.eq.f32.partialorder %v2116_v51, 8.507059e+37  ;;  %v2134_v31 = vand.u32 2147483648, %v4526_v52 }
 0x476   : > { %v2111_v0 = vadd.f32 %v4528_v56, %v2110_v39  ;;  %v2106_v40 = vmul.f32 %v4429_v42, %v2104_v18  ;;  %v2105_v19 = vmul.f32 %v4447_v3, %v2104_v18  ;;  %v2127_v42 = vadd.f32 %v3444_v41, %v2126_v62  ;;  %v1266_v18 = vld [vmem:[%s4965_s2 + $0x18] sm:$0xff] }
 0x477   : > { %v2157_v3 = vsub.f32 1.0, %v2156_v34  ;;  %v2135_v29 = vor.u32 1.1754944e-38, %v2134_v31  ;;  %vm2161_vm11 = vweird.f32 %v3446_v4  ;;  %vm2160_vm12 = vweird.f32 %v4545_v2 }
 0x478   : > { %v2115_v60 = vsel %vm2114_vm13, %v4528_v56, %v2111_v0  ;;  %v2132_v56 = vand.u32 2147483647, %v4526_v52  ;;  %v2131_v59 = vsel %vm2130_vm2, %v3444_v41, %v2127_v42  ;;  %v2164_v52 = vand.u32 2147483647, %v4545_v2  ;;  %vm2162_vm13 = vmor %vm2160_vm12, %vm2161_vm11 }
 0x479   : > { %v2120_v45 = vsel %vm2117_vm14, %v2119_v11, %v2115_v60  ;;  %v2158_v32 = vmul.f32 %v3446_v4, %v2157_v3  ;;  %v2182_v9 = vand.u32 2147483648, %v4561_v1  ;;  %vm2176_vm0 = vweird.f32 %v4561_v1 }
 0x47a   : > { %2204 = vperm.xlu2 %3362, %v2090_v28   ;;  %2199 = vperm.xlu0 %3363, %v2089_v61   ;;  %v2122_v25 = vmul.f32 %v4442_v58, %v2120_v45  ;;  %v2121_v63 = vmul.f32 %v4458_v14, %v2120_v45  ;;  %vm2133_vm10 = vcmp.eq.f32.partialorder %v2132_v56, 8.507059e+37  ;;  %v2166_v58 = vand.u32 2147483648, %v4545_v2 }
 0x47b   : > { %v3448_v50 = vpop.eup %3447  ;;  %v2136_v8 = vsel %vm2133_vm10, %v2135_v29, %v2131_v59  ;;  %v2159_v27 = vadd.f32 %v3446_v4, %v2158_v32  ;;  %vm2165_vm14 = vcmp.eq.f32.partialorder %v2164_v52, 8.507059e+37  ;;  %v2180_v2 = vand.u32 2147483647, %v4561_v1 }
 0x47c   : > { %v2172_v30 = vmul.f32 %v3448_v50, %v4561_v1  ;;  %v2138_v14 = vmul.f32 %v4466_v15, %v2136_v8  ;;  %v2137_v21 = vmul.f32 %v4431_v44, %v2136_v8  ;;  %v2167_v12 = vor.u32 1.1754944e-38, %v2166_v58  ;;  %v1267_v58 = vld [vmem:[%s4965_s2 + $0x20] sm:$0xff] }
 0x47d   : > { %v2163_v37 = vsel %vm2162_vm13, %v3446_v4, %v2159_v27  ;;  %vm2177_vm15 = vweird.f32 %v3448_v50  ;;  %v2154_v44 = vmul.f32 %v4444_v54, %v4542_v23  ;;  %v2183_v49 = vor.u32 1.1754944e-38, %v2182_v9  ;;  %v3366_v54 = vld [vmem:[%s4970_s7] ss:$0 sm:$0xff]  ;;  %v1265_v4 = vld [vmem:[%s4965_s2 + $0x10] sm:$0xff] }
 0x47e   : > { %v2173_v57 = vsub.f32 1.0, %v2172_v30  ;;  %v2168_v16 = vsel %vm2165_vm14, %v2167_v12, %v2163_v37  ;;  %vm2178_vm2 = vmor %vm2176_vm0, %vm2177_vm15  ;;  %vm2181_vm10 = vcmp.eq.f32.partialorder %v2180_v2, 8.507059e+37  ;;  %v1269_v37 = vld [vmem:[%s4965_s2 + $0x30] sm:$0xff]  ;;  %v1271_v12 = vld [vmem:[%s4965_s2 + $0x40] sm:$0xff] }
 0x47f   : > { %v2169_v15 = vmul.f32 %v4470_v13, %v2168_v16  ;;  %v2170_v28 = vmul.f32 %v4463_v24, %v2168_v16  ;;  %v1263_v24 = vld [vmem:[%s4965_s2] sm:$0xff] }
 0x480   : > { %v2174_v35 = vmul.f32 %v3448_v50, %v2173_v57 }
 0x482   : > { %2214 = vperm.xlu2 %3362, %v2106_v40   ;;  %2209 = vperm.xlu0 %3363, %v2105_v19   ;;  %v2175_v5 = vadd.f32 %v3448_v50, %v2174_v35 }
 0x484   : > { %v2179_v55 = vsel %vm2178_vm2, %v3448_v50, %v2175_v5 }
 0x485   : > { %v2184_v41 = vsel %vm2181_vm10, %v2183_v49, %v2179_v55 }
 0x486   : > { %v2185_v26 = vmul.f32 %v4455_v7, %v2184_v41  ;;  %v2186_v13 = vmul.f32 %v4473_v20, %v2184_v41  ;;  %v1264_v7 = vld [vmem:[%s4965_s2 + $0x8] sm:$0xff] }
 0x48a   : > { %2224 = vperm.xlu2 %3362, %v2122_v25   ;;  %2219 = vperm.xlu0 %3363, %v2121_v63  }
 0x492   : > { %2234 = vperm.xlu2 %3362, %v2138_v14   ;;  %2229 = vperm.xlu0 %3363, %v2137_v21   ;;  %v1268_v14 = vld [vmem:[%s4965_s2 + $0x28] sm:$0xff] }
 0x49a   : > { %2249 = vperm.xlu2 %3362, %v2169_v15   ;;  %2244 = vperm.xlu0 %3363, %v2154_v44   ;;  %v1270_v15 = vld [vmem:[%s4965_s2 + $0x38] sm:$0xff]  ;;  %v1272_v44 = vld [vmem:[%s4965_s2 + $0x48] sm:$0xff] }
 0x4a2   : > { %2259 = vperm.xlu2 %3362, %v2185_v26   ;;  %2254 = vperm.xlu0 %3363, %v2170_v28  }
 0x4aa   : > { %1671 = vrot.lane.b32.xlu2 %v3366_v54, %s3553_s21  ;;  %2264 = vperm.xlu0 %3363, %v2186_v13   ;;  %v1274_v13 = vld [vmem:[%s4965_s2 + $0x58] sm:$0xff] }
 0x4cc   : > { %v2195_v23 = vpop.permute.xlu2 %2194 }
 0x4cd   : > { %v2268_v17 = vmul.f32 %v2195_v23, %v1264_v7  ;;  %v1275_v7 = vld [vmem:[%s4965_s2 + $0x60] sm:$0xff] }
 0x4cf   : > { %v2284_v20 = vsel %vm1287_vm1, %v2268_v17, 0.0 }
 0x4d4   : > { %v2205_v61 = vpop.permute.xlu2 %2204 }
 0x4d5   : > { %v2270_v48 = vmul.f32 %v2205_v61, %v1266_v18 }
 0x4d7   : > { %v2293_v62 = vsel %vm1287_vm1, %v2270_v48, 0.0  ;;  %v3455_v48 = vld [vmem:[#allocation2] sm:$0xff] }
 0x4dc   : > { %v2215_v38 = vpop.permute.xlu2 %2214 }
 0x4dd   : > { %v2272_v52 = vmul.f32 %v2215_v38, %v1268_v14 }
 0x4df   : > { %v2302_v2 = vsel %vm1287_vm1, %v2272_v52, 0.0 }
 0x4e4   : > { %v2225_v39 = vpop.permute.xlu2 %2224  ;;  %v2190_v53 = vpop.permute.xlu0 %2189 }
 0x4e5   : > { %v2267_v47 = vmul.f32 %v2190_v53, %v1263_v24  ;;  %v2274_v28 = vmul.f32 %v2225_v39, %v1270_v15 }
 0x4e7   : > { %v2283_v1 = vsel %vm1287_vm1, %v2267_v47, 0.0  ;;  %v2240_v41 = vpop.permute.xlu1 %2239  ;;  %v2311_v53 = vsel %vm1287_vm1, %v2274_v28, 0.0  ;;  %v1277_v47 = vld [vmem:[%s4965_s2 + $0x70] sm:$0xff] }
 0x4e8   : > { %v2285_v0 = vadd.f32 %v2284_v20, %v2283_v1 }
 0x4ea   : > { %v2286_v43 = vrot.slane %v2285_v0, 4 }
 0x4ec   : > { %v2287_v40 = vadd.f32 %v2286_v43, %v2285_v0  ;;  %v2235_v19 = vpop.permute.xlu2 %2234  ;;  %v2200_v51 = vpop.permute.xlu0 %2199 }
 0x4ed   : > { %v2269_v60 = vmul.f32 %v2200_v51, %v1265_v4  ;;  %v2276_v54 = vmul.f32 %v2235_v19, %v1272_v44  ;;  %v1281_v44 = vld [vmem:[%s4971_s8 + $0x10] sm:$0xff] }
 0x4ee   : > { %v2288_v11 = vrot.slane %v2287_v40, 2 }
 0x4ef   : > { %v2292_v34 = vsel %vm1287_vm1, %v2269_v60, 0.0  ;;  %v2320_v39 = vsel %vm1287_vm1, %v2276_v54, 0.0  ;;  %v2358_v60 = vld [vmem:[%s4972_s9 + $0x18] sm:$0xff] }
 0x4f0   : > { %v2294_v45 = vadd.f32 %v2293_v62, %v2292_v34  ;;  %v2289_v3 = vadd.f32 %v2288_v11, %v2287_v40  ;;  %v2357_v62 = vld [vmem:[%s4972_s9 + $0x10] sm:$0xff]  ;;  %v2356_v34 = vld [vmem:[%s4972_s9 + $0x8] sm:$0xff]  ;;  %v4667_v11 = vand.u32 4294901760, %v2358_v60 }
 0x4f2   : > { %v2295_v42 = vrot.slane %v2294_v45, 4  ;;  %v2290_v56 = vrot.slane %v2289_v3, 1  ;;  %2489 = vmatpush.msrb.mxu3 %v4667_v11  ;;  %2389 = vmatpush.msrb.mxu0 %v4667_v11 }
 0x4f4   : > { %v2296_v50 = vadd.f32 %v2295_v42, %v2294_v45  ;;  %v2250_v31 = vpop.permute.xlu2 %2249  ;;  %v2210_v25 = vpop.permute.xlu0 %2209  ;;  %v2291_v30 = vadd.f32 %v2290_v56, %v2289_v3  ;;  %v4669_v45 = vand.u32 4294901760, %v2357_v62  ;;  %v4671_v42 = vand.u32 4294901760, %v2356_v34  ;;  %v2355_v3 = vld [vmem:[%s4972_s9] sm:$0xff] }
 0x4f5   : > { %v2271_v21 = vmul.f32 %v2210_v25, %v1267_v58  ;;  %v2279_v43 = vmul.f32 %v2250_v31, %v1275_v7  ;;  %v1276_v25 = vld [vmem:[%s4965_s2 + $0x68] sm:$0xff]  ;;  %v4731_v7 = vand.u32 4294901760, %v1281_v44 }
 0x4f6   : > { %v2297_v63 = vrot.slane %v2296_v50, 2  ;;  %2491 = vmatpush.msrb.mxu3 %v4669_v45  ;;  %2391 = vmatpush.msrb.mxu0 %v4669_v45 }
 0x4f7   : > { %v2301_v5 = vsel %vm1287_vm1, %v2271_v21, 0.0  ;;  %v2337_v56 = vsel %vm1287_vm1, %v2279_v43, 0.0  ;;  %v1282_v21 = vld [vmem:[%s4971_s8 + $0x18] sm:$0xff] }
 0x4f8   : > { %v2298_v59 = vadd.f32 %v2297_v63, %v2296_v50  ;;  %v2303_v26 = vadd.f32 %v2302_v2, %v2301_v5  ;;  %v4679_v63 = vand.u32 4294901760, %v2355_v3  ;;  %v4705_v15 = vand.u32 4294901760, %v1282_v21  ;;  %2493 = vmatpush.msrb.mxu3 %v4671_v42  ;;  %2393 = vmatpush.msrb.mxu0 %v4671_v42 }
 0x4fa   : > { %v2299_v32 = vrot.slane %v2298_v59, 1  ;;  %v2304_v24 = vrot.slane %v2303_v26, 4  ;;  %v4695_v14 = vsub.f32 %v2355_v3, %v4679_v63  ;;  %v4721_v54 = vsub.f32 %v1282_v21, %v4705_v15  ;;  %2495 = vmatpush.msrb.mxu3 %v4679_v63  ;;  %2395 = vmatpush.msrb.mxu0 %v4679_v63 }
 0x4fc   : > { %v2300_v29 = vadd.f32 %v2299_v32, %v2298_v59  ;;  %v2260_v8 = vpop.permute.xlu2 %2259  ;;  %v2220_v27 = vpop.permute.xlu0 %2219  ;;  %v2305_v40 = vadd.f32 %v2304_v24, %v2303_v26  ;;  %v2418_v59 = vsub.f32 %v2358_v60, %v4667_v11  ;;  %v4684_v32 = vsub.f32 %v2357_v62, %v4669_v45 }
 0x4fd   : > { %v2273_v55 = vmul.f32 %v2220_v27, %v1269_v37  ;;  %v2281_v19 = vmul.f32 %v2260_v8, %v1277_v47  ;;  %v2604_v47 = vand.u32 4294901760, %v4721_v54 }
 0x4fe   : > { %v4614_v57 = vsel %vm1859_vm3, %v2300_v29, %v2291_v30  ;;  %v4687_v30 = vsub.f32 %v2356_v34, %v4671_v42  ;;  %v2306_v29 = vrot.slane %v2305_v40, 2  ;;  %v2419_v37 = vand.u32 4294901760, %v2418_v59  ;;  %2460 = vmatpush.msrb.mxu2 %v2418_v59 }
 0x4ff   : > { %v2310_v61 = vsel %vm1287_vm1, %v2273_v55, 0.0  ;;  %v4692_v8 = vsel %vm1287_vm1, %v2281_v19, 0.0 }
 0x500   : > { %v2312_v1 = vadd.f32 %v2311_v53, %v2310_v61  ;;  %v2420_v55 = vsub.f32 %v2418_v59, %v2419_v37  ;;  %2463 = vmatpush.msrb.mxu2 %v4684_v32  ;;  %2518 = vmatpush.msra.mxu0 %v2419_v37 }
 0x502   : > { %v2313_v50 = vrot.slane %v2312_v1, 4  ;;  %v2421_v61 = vand.u32 4294901760, %v2420_v55  ;;  %2466 = vmatpush.msrb.mxu2 %v4687_v30 }
 0x504   : > { %v1672_v35 = vpop.permute.xlu2 %1671  ;;  %v2230_v16 = vpop.permute.xlu0 %2229  ;;  %2422 = vmatpush.msrb.mxu1 %v2421_v61  ;;  %2469 = vmatpush.msrb.mxu2 %v4695_v14 }
 0x505   : > { %v1674_v9 = vadd.f32 %v1672_v35, %v4270_v33  ;;  %v2275_v49 = vmul.f32 %v2230_v16, %v1271_v12  ;;  %v1273_v33 = vld [vmem:[%s4965_s2 + $0x50] sm:$0xff]  ;;  %v2425_v35 = vand.u32 4294901760, %v4684_v32  ;;  %v2431_v12 = vand.u32 4294901760, %v4687_v30 }
 0x506   : > { %v2277_v23 = vmul.f32 %v2240_v41, %v1273_v33  ;;  %v2314_v16 = vadd.f32 %v2313_v50, %v2312_v1  ;;  %2574 = vmatpush.msra.mxu2 %v4705_v15 }
 0x507   : > { %2752 = vrot.lane.b32.xlu1 %v1674_v9, %s3554_s30  ;;  %2775 = vrot.lane.b32.xlu0 %v1674_v9, %s3553_s21  ;;  %v2319_v38 = vsel %vm1287_vm1, %v2275_v49, 0.0  ;;  %v2437_v9 = vand.u32 4294901760, %v4695_v14  ;;  %v2426_v49 = vsub.f32 %v4684_v32, %v2425_v35  ;;  %v2432_v33 = vsub.f32 %v4687_v30, %v2431_v12 }
 0x508   : > { %v2321_v18 = vadd.f32 %v2320_v39, %v2319_v38  ;;  %v2328_v0 = vsel %vm1287_vm1, %v2277_v23, 0.0  ;;  %v4727_v23 = vadd.f32 %v2306_v29, %v2305_v40  ;;  %v2315_v24 = vrot.slane %v2314_v16, 2  ;;  %v1278_v39 = vld [vmem:[%s4965_s2 + $0x78] sm:$0xff]  ;;  %2576 = vmatpush.msra.mxu2 %v4731_v7  ;;  %2522 = vmatpush.msra.mxu0 %v2425_v35 }
 0x509   : > { %v2438_v28 = vsub.f32 %v4695_v14, %v2437_v9  ;;  %v2427_v38 = vand.u32 4294901760, %v2426_v49  ;;  %v2433_v1 = vand.u32 4294901760, %v2432_v33 }
 0x50a   : > { %v2322_v31 = vrot.slane %v2321_v18, 4  ;;  %v2316_v50 = vadd.f32 %v2315_v24, %v2314_v16  ;;  %2526 = vmatpush.msra.mxu0 %v2431_v12 }
 0x50b   : > { %v2439_v19 = vand.u32 4294901760, %v2438_v28  ;;  %2428 = vmatpush.msrb.mxu1 %v2427_v38 }
 0x50c   : > { %v2245_v17 = vpop.permute.xlu0 %2244  ;;  %v2323_v5 = vadd.f32 %v2322_v31, %v2321_v18  ;;  %2530 = vmatpush.msra.mxu0 %v2437_v9 }
 0x50d   : > { %v2278_v20 = vmul.f32 %v2245_v17, %v1274_v13  ;;  %v1280_v13 = vld [vmem:[%s4971_s8 + $0x8] sm:$0xff]  ;;  %2434 = vmatpush.msrb.mxu1 %v2433_v1 }
 0x50e   : > { %v2324_v17 = vrot.slane %v2323_v5, 2  ;;  %v4742_v18 = vand.u32 4294901760, %v1280_v13 }
 0x50f   : > { %v2329_v4 = vsel %vm1287_vm1, %v2278_v20, 0.0  ;;  %2791 = vrot.lane.b32.xlu0 %v3455_v48, %s3553_s21  ;;  %v1279_v20 = vld [vmem:[%s4971_s8] sm:$0xff]  ;;  %2440 = vmatpush.msrb.mxu1 %v2439_v19 }
 0x510   : > { %v2330_v51 = vadd.f32 %v2329_v4, %v2328_v0  ;;  %v4745_v0 = vsub.f32 %v1281_v44, %v4731_v7  ;;  %v4747_v43 = vand.u32 4294901760, %v1279_v20  ;;  %v4755_v34 = vsub.f32 %v1280_v13, %v4742_v18  ;;  %2578 = vmatpush.msra.mxu2 %v4742_v18 }
 0x511   : > { %v2325_v31 = vadd.f32 %v2324_v17, %v2323_v5  ;;  %v2317_v44 = vrot.slane %v2316_v50, 1  ;;  %2549 = vmatpush.msra.mxu1 %v4667_v11  ;;  %v2803_v11 = vld [vmem:[%s4975_s12 + $0x18] sm:$0xff] }
 0x512   : > { %v2331_v27 = vrot.slane %v2330_v51, 4  ;;  %v2610_v62 = vand.u32 4294901760, %v4745_v0  ;;  %v4758_v3 = vsub.f32 %v1279_v20, %v4747_v43  ;;  %v2616_v29 = vand.u32 4294901760, %v4755_v34  ;;  %2580 = vmatpush.msra.mxu2 %v4747_v43 }
 0x513   : > { %2551 = vmatpush.msra.mxu1 %v4669_v45  ;;  %v4789_v61 = vand.u32 4294901760, %v2803_v11  ;;  %v2802_v45 = vld [vmem:[%s4975_s12 + $0x10] sm:$0xff] }
 0x514   : > { %v2255_v58 = vpop.permute.xlu0 %2254  ;;  %v2332_v41 = vadd.f32 %v2331_v27, %v2330_v51  ;;  %v2605_v51 = vsub.f32 %v4721_v54, %v2604_v47  ;;  %v2611_v32 = vsub.f32 %v4745_v0, %v2610_v62  ;;  %v2622_v27 = vand.u32 4294901760, %v4758_v3 }
 0x515   : > { %v2280_v52 = vmul.f32 %v2255_v58, %v1276_v25  ;;  %v2308_v58 = vrot.slane %v4727_v23, 1  ;;  %v2617_v16 = vsub.f32 %v4755_v34, %v2616_v29  ;;  %2553 = vmatpush.msra.mxu1 %v4671_v42  ;;  %v2801_v42 = vld [vmem:[%s4975_s12 + $0x8] sm:$0xff]  ;;  %v4805_v1 = vsub.f32 %v2803_v11, %v4789_v61 }
 0x516   : > { %v2333_v4 = vrot.slane %v2332_v41, 2  ;;  %v2612_v35 = vand.u32 4294901760, %v2611_v32  ;;  %v2623_v5 = vsub.f32 %v4758_v3, %v2622_v27 }
 0x517   : > { %v2338_v2 = vsel %vm1287_vm1, %v2280_v52, 0.0  ;;  %v2618_v55 = vand.u32 4294901760, %v2617_v16  ;;  %v2309_v30 = vadd.f32 %v2308_v58, %v4727_v23  ;;  %2555 = vmatpush.msra.mxu1 %v4679_v63  ;;  %v4801_v63 = vand.u32 4294901760, %v2802_v45 }
 0x518   : > { %v2339_v26 = vadd.f32 %v2338_v2, %v2337_v56  ;;  %v2606_v56 = vand.u32 4294901760, %v2605_v51  ;;  %v2334_v21 = vadd.f32 %v2333_v4, %v2332_v41  ;;  %v2624_v49 = vand.u32 4294901760, %v2623_v5 }
 0x519   : > { %v2368_v23 = vsel %vm1861_vm4, %v2309_v30, %v4614_v57  ;;  %v4808_v4 = vand.u32 4294901760, %v2801_v42  ;;  %v4816_v51 = vsub.f32 %v2802_v45, %v4801_v63 }
 0x51a   : > { %v2340_v53 = vrot.slane %v2339_v26, 4  ;;  %2607 = vmatpush.msra.mxu3 %v2606_v56  ;;  %v2335_v33 = vrot.slane %v2334_v21, 1 }
 0x51c   : > { %v2341_v48 = vadd.f32 %v2340_v53, %v2339_v26  ;;  %v2265_v40 = vpop.permute.xlu0 %2264  ;;  %2613 = vmatpush.msra.mxu3 %v2612_v35  ;;  %v2318_v26 = vadd.f32 %v2317_v44, %v2316_v50  ;;  %v2336_v14 = vadd.f32 %v2335_v33, %v2334_v21  ;;  %v2847_v50 = vand.u32 4294901760, %v4805_v1 }
 0x51d   : > { %v2282_v60 = vmul.f32 %v2265_v40, %v1278_v39 }
 0x51e   : > { %v2342_v25 = vrot.slane %v2341_v48, 2  ;;  %2619 = vmatpush.msra.mxu3 %v2618_v55  ;;  %v2369_v24 = vsel %vm1863_vm5, %v2318_v26, %v2368_v23  ;;  %v2848_v58 = vsub.f32 %v4805_v1, %v2847_v50 }
 0x51f   : > { %v2347_v59 = vsel %vm1287_vm1, %v2282_v60, 0.0 }
 0x520   : > { %v2348_v52 = vadd.f32 %v2347_v59, %v4692_v8  ;;  %v2343_v37 = vadd.f32 %v2342_v25, %v2341_v48  ;;  %v2326_v8 = vrot.slane %v2325_v31, 1  ;;  %2625 = vmatpush.msra.mxu3 %v2624_v49  ;;  %v2800_v48 = vld [vmem:[%s4975_s12] sm:$0xff]  ;;  %v4824_v25 = vsub.f32 %v2801_v42, %v4808_v4 }
 0x521   : > { %v2853_v59 = vand.u32 4294901760, %v4816_v51  ;;  %v2849_v5 = vand.u32 4294901760, %v2848_v58 }
 0x522   : > { %v2349_v2 = vrot.slane %v2348_v52, 4  ;;  %v2344_v12 = vrot.slane %v2343_v37, 1  ;;  %v2327_v13 = vadd.f32 %v2326_v8, %v2325_v31  ;;  %v4821_v31 = vand.u32 4294901760, %v2800_v48 }
 0x523   : > { %v2854_v35 = vsub.f32 %v4816_v51, %v2853_v59 }
 0x524   : > { %v2350_v41 = vadd.f32 %v2349_v2, %v2348_v52  ;;  %v2345_v38 = vadd.f32 %v2344_v12, %v2343_v37  ;;  %v2370_v53 = vsel %vm1865_vm6, %v2327_v13, %v2369_v24  ;;  %v4834_v21 = vsub.f32 %v2800_v48, %v4821_v31 }
 0x525   : > { %v2371_v39 = vsel %vm1867_vm7, %v2336_v14, %v2370_v53  ;;  %v2859_v52 = vand.u32 4294901760, %v4824_v25 }
 0x526   : > { %v2351_v28 = vrot.slane %v2350_v41, 2  ;;  %v2372_v57 = vsel %vm1869_vm8, %v2345_v38, %v2371_v39  ;;  %v2865_v44 = vand.u32 4294901760, %v4834_v21 }
 0x528   : > { %v2352_v9 = vadd.f32 %v2351_v28, %v2350_v41  ;;  %v3367_v28 = vld [vmem:[%s4973_s10] ss:$0 sm:$0xff] }
 0x52a   : > { %v2353_v17 = vrot.slane %v2352_v9, 1 }
 0x52c   : > { %v2354_v20 = vadd.f32 %v2353_v17, %v2352_v9 }
 0x52e   : > { %v2373_v40 = vsel %vm1871_vm9, %v2354_v20, %v2372_v57 }
 0x52f   : > { %v2374_v19 = vsel %vm1287_vm1, %v2373_v40, 0 }
 0x530   : > { %v4818_v60 = vand.u32 4294901760, %v2374_v19 }
 0x532   : > { %2442 = vmatmul.f32.vlgmr.msrb.gmra.mxu1 %v4818_v60  ;;  %v2397_v56 = vsub.f32 %v2374_v19, %v4818_v60 }
 0x533   : > { %2674 = vmatpush.msrb.mxu1 %v4705_v15 }
 0x534   : > { %2472 = vmatmul.f32.vlgmr.msrb.gmra.mxu2 %v2397_v56  ;;  %v2398_v32 = vand.u32 4294901760, %v2397_v56 }
 0x535   : > { %2676 = vmatpush.msrb.mxu1 %v4731_v7  ;;  %2703 = vmatpush.msrb.mxu2 %v2604_v47  ;;  %v2860_v47 = vsub.f32 %v4824_v25, %v2859_v52 }
 0x536   : > { %2499 = vmatmul.f32.vlgmr.msrb.gmra.mxu3 %v2398_v32  ;;  %v2399_v37 = vsub.f32 %v2397_v56, %v2398_v32 }
 0x537   : > { %2678 = vmatpush.msrb.mxu1 %v4742_v18  ;;  %2707 = vmatpush.msrb.mxu2 %v2610_v62  ;;  %v2855_v62 = vand.u32 4294901760, %v2854_v35 }
 0x538   : > { %v2400_v16 = vand.u32 4294901760, %v2399_v37  ;;  %2734 = vmatpush.msrb.mxu3 %v4705_v15  ;;  %v2866_v15 = vsub.f32 %v4834_v21, %v2865_v44 }
 0x539   : > { %2680 = vmatpush.msrb.mxu1 %v4747_v43  ;;  %2711 = vmatpush.msrb.mxu2 %v2616_v29  ;;  %v2861_v29 = vand.u32 4294901760, %v2860_v47 }
 0x53a   : > { %2401 = vmatmul.f32.vlgmr.msrb.gmra.mxu0 %v2400_v16  ;;  %2557 = vmatmul.f32.vlgmr.msra.gmra.mxu1 %v4818_v60 }
 0x53b   : > { %2736 = vmatpush.msrb.mxu3 %v4731_v7  ;;  %2645 = vmatpush.msrb.mxu0 %v4721_v54 }
 0x53c   : > { %2586 = vmatmul.f32.vlgmr.msra.gmra.mxu2 %v4236_v10  ;;  %2850 = vmatpush.msra.mxu1 %v2849_v5  ;;  %v2867_v10 = vand.u32 4294901760, %v2866_v15 }
 0x53d   : > { %2715 = vmatpush.msrb.mxu2 %v2622_v27  ;;  %2738 = vmatpush.msrb.mxu3 %v4742_v18 }
 0x53e   : > { %2627 = vmatmul.f32.vlgmr.msra.gmra.mxu3 %v4188_v36  ;;  %2648 = vmatpush.msrb.mxu0 %v4745_v0 }
 0x53f   : > { %2740 = vmatpush.msrb.mxu3 %v4747_v43  ;;  %2856 = vmatpush.msra.mxu1 %v2855_v62 }
 0x540   : > { %2888 = vmatpush.msra.mxu2 %v4805_v1  ;;  %2651 = vmatpush.msrb.mxu0 %v4755_v34 }
 0x541   : > { %2862 = vmatpush.msra.mxu1 %v2861_v29  ;;  %2917 = vmatpush.msra.mxu3 %v4789_v61 }
 0x542   : > { %2532 = vmatmul.f32.vlgmr.msra.gmra.mxu0 %v4818_v60  ;;  %2684 = vmatmul.f32.vlgmr.msrb.gmra.mxu1 %v4216_v46 }
 0x543   : > { %2891 = vmatpush.msra.mxu2 %v4816_v51  ;;  %2654 = vmatpush.msrb.mxu0 %v4758_v3 }
 0x544   : > { %2717 = vmatmul.f32.vlgmr.msrb.gmra.mxu2 %v4188_v36  ;;  %2868 = vmatpush.msra.mxu1 %v2867_v10 }
 0x545   : > { %2894 = vmatpush.msra.mxu2 %v4824_v25  ;;  %2919 = vmatpush.msra.mxu3 %v4801_v63  ;;  %v2798_v25 = vld [vmem:[%s4974_s11 + $0x10] sm:$0xff] }
 0x546   : > { %2742 = vmatmul.f32.vlgmr.msrb.gmra.mxu3 %v4188_v36  ;;  %2817 = vmatpush.msra.mxu0 %v4789_v61 }
 0x547   : > { %2897 = vmatpush.msra.mxu2 %v4834_v21  ;;  %2921 = vmatpush.msra.mxu3 %v4808_v4 }
 0x548   : > { %2977 = vmatpush.msrb.mxu1 %v4789_v61  ;;  %2819 = vmatpush.msra.mxu0 %v4801_v63 }
 0x549   : > { %2923 = vmatpush.msra.mxu3 %v4821_v31 }
 0x54a   : > { %2657 = vmatmul.f32.vlgmr.msrb.gmra.mxu0 %v4202_v6  ;;  %2870 = vmatmul.f32.vlgmr.msra.gmra.mxu1 %v4818_v60 }
 0x54b   : > { %2979 = vmatpush.msrb.mxu1 %v4801_v63  ;;  %2821 = vmatpush.msra.mxu0 %v4808_v4 }
 0x54c   : > { %2900 = vmatmul.f32.vlgmr.msra.gmra.mxu2 %v2397_v56 }
 0x54d   : > { %2981 = vmatpush.msrb.mxu1 %v4808_v4  ;;  %2823 = vmatpush.msra.mxu0 %v4821_v31 }
 0x54e   : > { %2927 = vmatmul.f32.vlgmr.msra.gmra.mxu3 %v2398_v32 }
 0x54f   : > { %2946 = vmatpush.msrb.mxu0 %v2847_v50  ;;  %2983 = vmatpush.msrb.mxu1 %v4821_v31  ;;  %v2799_v31 = vld [vmem:[%s4974_s11 + $0x18] sm:$0xff] }
 0x550   : > { %v3006_v56 = vand.u32 4294901760, %v2799_v31 }
 0x551   : > { %2950 = vmatpush.msrb.mxu0 %v2853_v59  ;;  %v3008_v59 = vand.u32 4294901760, %v2798_v25 }
 0x552   : > { %2829 = vmatmul.f32.vlgmr.msra.gmra.mxu0 %v2400_v16  ;;  %2985 = vmatmul.f32.vlgmr.msrb.gmra.mxu1 %v4818_v60  ;;  %v3036_v32 = vsub.f32 %v2799_v31, %v3006_v56 }
 0x553   : > { %2954 = vmatpush.msrb.mxu0 %v2859_v52  ;;  %v3042_v58 = vsub.f32 %v2798_v25, %v3008_v59  ;;  %3107 = vmatpush.msra.mxu1 %v3006_v56 }
 0x554   : > { %3007 = vmatpush.msrb.mxu2 %v3006_v56  ;;  %v3037_v21 = vand.u32 4294901760, %v3036_v32 }
 0x555   : > { %2958 = vmatpush.msrb.mxu0 %v2865_v44  ;;  %v3043_v52 = vand.u32 4294901760, %v3042_v58  ;;  %3109 = vmatpush.msra.mxu1 %v3008_v59 }
 0x556   : > { %3009 = vmatpush.msrb.mxu2 %v3008_v59  ;;  %v3038_v37 = vsub.f32 %v3036_v32, %v3037_v21 }
 0x557   : > { %3078 = vmatpush.msra.mxu0 %v3036_v32  ;;  %v3044_v35 = vsub.f32 %v3042_v58, %v3043_v52 }
 0x558   : > { %v3039_v16 = vand.u32 4294901760, %v3038_v37 }
 0x559   : > { %3081 = vmatpush.msra.mxu0 %v3042_v58  ;;  %v3045_v5 = vand.u32 4294901760, %v3044_v35 }
 0x55a   : > { %2960 = vmatmul.f32.vlgmr.msrb.gmra.mxu0 %v4818_v60  ;;  %3040 = vmatpush.msrb.mxu3 %v3039_v16 }
 0x55c   : > { %3046 = vmatpush.msrb.mxu3 %v3045_v5 }
 0x579   : > { %v2753_v61 = vpop.permute.xlu1 %2752  ;;  %v2776_v48 = vpop.permute.xlu0 %2775 }
 0x581   : > { %v2792_v44 = vpop.permute.xlu0 %2791 }
 0x5af   : > { %v2443_v36 = vpop.f32.mrf.mxu1 }
 0x5b7   : > { %v2402_v6 = vpop.f32.mrf.mxu0  ;;  %v2473_v46 = vpop.f32.mrf.mxu2 }
 0x5b8   : > { %v2444_v54 = vadd.f32 %v2443_v36, %v2402_v6  ;;  %v2558_v43 = vpop.f32.mrf.mxu1  ;;  %v2797_v36 = vld [vmem:[%s4974_s11 + $0x8] sm:$0xff]  ;;  %v2796_v6 = vld [vmem:[%s4974_s11] sm:$0xff] }
 0x5b9   : > { %v2500_v7 = vpop.f32.mrf.mxu3 }
 0x5ba   : > { %v2474_v18 = vadd.f32 %v2473_v46, %v2444_v54  ;;  %v3010_v46 = vand.u32 4294901760, %v2797_v36  ;;  %v3012_v54 = vand.u32 4294901760, %v2796_v6 }
 0x5bc   : > { %v2501_v0 = vadd.f32 %v2500_v7, %v2474_v18  ;;  %v3048_v7 = vsub.f32 %v2797_v36, %v3010_v46  ;;  %v3054_v18 = vsub.f32 %v2796_v6, %v3012_v54  ;;  %3111 = vmatpush.msra.mxu1 %v3010_v46  ;;  %3011 = vmatpush.msrb.mxu2 %v3010_v46 }
 0x5be   : > { %3084 = vmatpush.msra.mxu0 %v3048_v7  ;;  %3113 = vmatpush.msra.mxu1 %v3012_v54 }
 0x5bf   : > { %v2533_v34 = vpop.f32.mrf.mxu0  ;;  %v2587_v27 = vpop.f32.mrf.mxu2  ;;  %3013 = vmatpush.msrb.mxu2 %v3012_v54 }
 0x5c0   : > { %v2534_v3 = vadd.f32 %v2533_v34, %v2501_v0  ;;  %v2685_v30 = vpop.f32.mrf.mxu1  ;;  %v3049_v0 = vand.u32 4294901760, %v3048_v7  ;;  %3087 = vmatpush.msra.mxu0 %v3054_v18 }
 0x5c1   : > { %v2628_v8 = vpop.f32.mrf.mxu3  ;;  %3136 = vmatpush.msra.mxu2 %v3037_v21 }
 0x5c2   : > { %v2559_v2 = vadd.f32 %v2558_v43, %v2534_v3  ;;  %v3055_v43 = vand.u32 4294901760, %v3054_v18  ;;  %v3050_v34 = vsub.f32 %v3048_v7, %v3049_v0 }
 0x5c3   : > { %3140 = vmatpush.msra.mxu2 %v3043_v52 }
 0x5c4   : > { %v2588_v55 = vadd.f32 %v2587_v27, %v2559_v2  ;;  %v3056_v3 = vsub.f32 %v3054_v18, %v3055_v43  ;;  %v3051_v27 = vand.u32 4294901760, %v3050_v34 }
 0x5c5   : > { %3144 = vmatpush.msra.mxu2 %v3049_v0 }
 0x5c6   : > { %v2629_v49 = vadd.f32 %v2628_v8, %v2588_v55  ;;  %v3057_v2 = vand.u32 4294901760, %v3056_v3  ;;  %3052 = vmatpush.msrb.mxu3 %v3051_v27 }
 0x5c7   : > { %v2658_v33 = vpop.f32.mrf.mxu0  ;;  %v2718_v11 = vpop.f32.mrf.mxu2  ;;  %3148 = vmatpush.msra.mxu2 %v3055_v43 }
 0x5c8   : > { %v2659_v41 = vadd.f32 %v2658_v33, %v2629_v49  ;;  %3058 = vmatpush.msrb.mxu3 %v3057_v2 }
 0x5c9   : > { %v2743_v13 = vpop.f32.mrf.mxu3 }
 0x5ca   : > { %v2686_v12 = vadd.f32 %v2685_v30, %v2659_v41  ;;  %3167 = vmatpush.msra.mxu3 %v3006_v56 }
 0x5cc   : > { %v2719_v26 = vadd.f32 %v2718_v11, %v2686_v12  ;;  %3169 = vmatpush.msra.mxu3 %v3008_v59 }
 0x5ce   : > { %v2744_v14 = vadd.f32 %v2743_v13, %v2719_v26  ;;  %3171 = vmatpush.msra.mxu3 %v3010_v46  ;;  %v2871_v26 = vpop.f32.mrf.mxu1 }
 0x5cf   : > { %v2830_v11 = vpop.f32.mrf.mxu0  ;;  %v2901_v13 = vpop.f32.mrf.mxu2 }
 0x5d0   : > { %v2750_v9 = vadd.f32 %v3367_v28, %v2744_v14  ;;  %3173 = vmatpush.msra.mxu3 %v3012_v54  ;;  %v2872_v28 = vadd.f32 %v2871_v26, %v2830_v11 }
 0x5d2   : > { %v2755_v45 = vadd.f32 %v2753_v61, %v2750_v9  ;;  %v2902_v14 = vadd.f32 %v2901_v13, %v2872_v28 }
 0x5d4   : > { %v3296_v23 = vmul.f32 -1.442695, %v2755_v45 }
 0x5d6   : > { %3449 = vpow2.f32 %v3296_v23 }
 0x5d7   : > { %v2961_v61 = vpop.f32.mrf.mxu0 }
 0x5dc   : > { %v3450_v38 = vpop.eup %3449 }
 0x5dd   : > { %v2759_v24 = vadd.f32 1.0, %v3450_v38  ;;  %v2986_v38 = vpop.f32.mrf.mxu1 }
 0x5df   : > { %3451 = vrcp.f32 %v2759_v24  ;;  %v2771_v63 = vand.u32 2147483648, %v2759_v24  ;;  %v2769_v20 = vand.u32 2147483647, %v2759_v24  ;;  %vm2765_vm4 = vweird.f32 %v2759_v24 }
 0x5e1   : > { %v2772_v57 = vor.u32 1.1754944e-38, %v2771_v63  ;;  %vm2770_vm6 = vcmp.eq.f32.partialorder %v2769_v20, 8.507059e+37 }
 0x5e5   : > { %v3452_v17 = vpop.eup %3451 }
 0x5e6   : > { %v2761_v42 = vmul.f32 %v3452_v17, %v2759_v24  ;;  %vm2766_vm3 = vweird.f32 %v3452_v17 }
 0x5e7   : > { %vm2767_vm5 = vmor %vm2765_vm4, %vm2766_vm3 }
 0x5e8   : > { %v2762_v53 = vsub.f32 1.0, %v2761_v42 }
 0x5ea   : > { %v2763_v39 = vmul.f32 %v3452_v17, %v2762_v53 }
 0x5ec   : > { %v2764_v1 = vadd.f32 %v3452_v17, %v2763_v39 }
 0x5ee   : > { %v2768_v4 = vsel %vm2767_vm5, %v3452_v17, %v2764_v1 }
 0x5ef   : > { %v2773_v40 = vsel %vm2770_vm6, %v2772_v57, %v2768_v4 }
 0x5f0   : > { %v2778_v19 = vmul.f32 %v2776_v48, %v2773_v40  ;;  %v2785_v47 = vsub.f32 1.0, %v2773_v40  ;;  %v2794_v15 = vmul.f32 %v2792_v44, %v2773_v40 }
 0x5f2   : > { %2780 = vrot.lane.b32.xlu2 %v2778_v19, %s3555_s18  ;;  %s5005_s18 = sand.u32 1, %s3542_s22  }
 0x64c   : > { %v2781_v51 = vpop.permute.xlu2 %2780 }
 0x64d   : > { %v2783_v60 = vadd.f32 %v2781_v51, %v2750_v9  ;;  %v2928_v9 = vpop.f32.mrf.mxu3 }
 0x64e   : > { %v2929_v45 = vadd.f32 %v2928_v9, %v2902_v14 }
 0x64f   : > { %3453 = vtanh.f32 %v2783_v60 }
 0x650   : > { %v2962_v23 = vadd.f32 %v2961_v61, %v2929_v45 }
 0x652   : > { %v2987_v24 = vadd.f32 %v2986_v38, %v2962_v23 }
 0x655   : > { %v3454_v50 = vpop.eup %3453 }
 0x656   : > { %2787 = vrot.lane.b32.xlu1 %v3454_v50, %s3554_s30 }
 0x6c8   : > { %v2788_v62 = vpop.permute.xlu1 %2787 }
 0x6c9   : > { %v2790_v29 = vmul.f32 %v2788_v62, %v2785_v47 }
 0x6cb   : > { %v2795_v10 = vadd.f32 %v2794_v15, %v2790_v29 }
 0x6cd   : > { %2990 = vrot.lane.b32.xlu2 %v2795_v10, %s3554_s30  ;;  %s3556_s30 = smov [#allocation6]  }
 0x6ce   : > { %s3215_s21 = sshll.u32 %s3556_s30, 4  ;;  %s5004_s30 = sld [smem:[#allocation18_spill]]  ;;  %s3216_s21 = int_to_ptr.vmem [resolvable:$true] %s3215_s21 }
 0x6d4   : > { %v3368_v51 = vld [vmem:[%s5004_s30] ss:$0 sm:$0xff] }
 0x727   : > { %v2991_v8 = vpop.permute.xlu2 %2990 }
 0x728   : > { %v2992_v55 = vsel %vm1287_vm1, %v2991_v8, 0  ;;  %3186 = vst.msk [vmem:[#allocation2] sm:$0xff] %vm1287_vm1, %v2991_v8 }
 0x729   : > { %v3014_v49 = vand.u32 4294901760, %v2992_v55  ;;  %3189 = vst.msk [vmem:[#allocation6] sm:$0xff] %vm1287_vm1, %v2991_v8  ;;  %vm3187_vm1 = vcmask 523264  }
 0x72a   : > { %3313 = dma.vmem_to_hbm [thread:$0]  (%p369_p2), %s3216_s21, 128, %s3218_s23, [#allocation7]  }
 0x72b   : > { %v3015_v33 = vsub.f32 %v2992_v55, %v3014_v49  ;;  %3060 = vmatmul.f32.vlgmr.msrb.gmra.mxu3 %v3014_v49  ;;  %s3203_s21 = sshll.u32 %s509_s27, 4  ;;  %s3191_s23 = scalar_lea.sflag [#allocation5], %s5005_s18  ;;  %s3204_s21 = int_to_ptr.vmem [resolvable:$true] %s3203_s21 }
 0x72d   : > { %v3016_v41 = vand.u32 4294901760, %v3015_v33  ;;  %3090 = vmatmul.f32.vlgmr.msra.gmra.mxu0 %v3015_v33 }
 0x72f   : > { %v3017_v30 = vsub.f32 %v3015_v33, %v3016_v41  ;;  %3117 = vmatmul.f32.vlgmr.msra.gmra.mxu1 %v3016_v41 }
 0x731   : > { %v3018_v12 = vand.u32 4294901760, %v3017_v30 }
 0x733   : > { %3019 = vmatmul.f32.vlgmr.msrb.gmra.mxu2 %v3018_v12  ;;  %3175 = vmatmul.f32.vlgmr.msra.gmra.mxu3 %v3014_v49 }
 0x73b   : > { %3150 = vmatmul.f32.vlgmr.msra.gmra.mxu2 %v3014_v49 }
 0x7aa   : > { %v3091_v39 = vpop.f32.mrf.mxu0 }
 0x7ac   : > { %v3118_v1 = vpop.f32.mrf.mxu1 }
 0x7ae   : > { %v3061_v17 = vpop.f32.mrf.mxu3 }
 0x7b6   : > { %v3020_v42 = vpop.f32.mrf.mxu2  ;;  %v3176_v40 = vpop.f32.mrf.mxu3 }
 0x7b7   : > { %v3021_v53 = vadd.f32 %v3020_v42, %v2987_v24 }
 0x7b9   : > { %v3062_v63 = vadd.f32 %v3061_v17, %v3021_v53 }
 0x7bb   : > { %v3092_v20 = vadd.f32 %v3091_v39, %v3062_v63 }
 0x7bd   : > { %v3119_v57 = vadd.f32 %v3118_v1, %v3092_v20 }
 0x7be   : > { %v3151_v4 = vpop.f32.mrf.mxu2 }
 0x7bf   : > { %v3152_v48 = vadd.f32 %v3151_v4, %v3119_v57 }
 0x7c1   : > { %v3177_v19 = vadd.f32 %v3176_v40, %v3152_v48 }
 0x7c3   : > { %v3179_v60 = vadd.f32 %v3177_v19, %v4268_v22 }
 0x7c5   : > { %v3184_v50 = vadd.f32 %v3368_v51, %v3179_v60 }
 0x7c7   : > { %3188 = vst.msk [vmem:[%s509_s27] sm:$0xff] %vm3187_vm1, %v3184_v50 }
 0x7c8   : > { %3511 = shalt.err (!%p3508_p7)
}
 0x7c9   : > { %3311 = dma.vmem_to_hbm [thread:$0]  (%p3682_p5), %s3204_s21, 128, %s3206_s0, %s3191_s23  }
 0x7ca   : > { %3529 = dma.done.wait (%p369_p2), [#allocation7], 128  }
 0x7cb   : > { %3531 = vsyncadd (%p369_p2), [#allocation7], 4294967168 }
 0x7cc PF: > { %s5006_s27 = sld [smem:[#allocation12_spill]] }
 0x7cd   : > { %s5007_s19 = sld [smem:[#allocation10_spill]] }
 0x7d2   : > { %p3323_p8 = scmp.ge.s32.totalorder %s5006_s27, 2 }
 0x7d3   : > { %s3234_s29 = sand.u32 1, %s5007_s19  }
 0x7d4   : > { %p3318_p9 = pnand %p3323_p8, %p3686_p6  ;;  %s3235_s26 = scalar_lea.sflag [#allocation5], %s3234_s29 }
 0x7d6   : > { %p3319_p10 = pneg %p3318_p9 }
 0x7d8   : > { %3533 = dma.done.wait (%p3319_p10), %s3235_s26, 128  }
 0x7d9   : > { %3535 = vsyncadd (%p3319_p10), %s3235_s26, 4294967168  ;;  %s5009_s24 = sld [smem:[#allocation13_spill]]  ;;  %s5012_s21 = smov %s3542_s22 }
 0x7da   : > { %s5010_s17 = sld [smem:[#allocation11_spill]] }
 0x7db   : > { %s5011_s23 = sld [smem:[#allocation14_spill]] }
 0x7df   : > { %p28_p5 = scmp.ge.s32.totalorder %s5009_s24, 6  }
 0x7e0   : > { %s5013_s22 = smov %s5010_s17 }
 0x7e1   :  { %30 = sbr.rel (!%p28_p5) target bundleno = 7 (0x7), region = 127 }
 0x7e6   :  { %3241 = vsyncpa [#allocation5], 1 }
 0x7e7   :  { %3243 = vsyncpa [#allocation5 + $0x1], 1 }
 0x7e8   :  { %3244 = vsyncpa [#allocation7], 1 }

</bundles_post_ra>
